<compile_context>
chip_gen: v6e
topology: v6e:2x2x1
jax: 0.10.0
libtpu: 0.0.40
codegen_flags: <defaults>
</compile_context>

<pallas_src>
import math

import jax
import jax.numpy as jnp
from jax import lax
from jax.experimental import pallas as pl
from jax.experimental.pallas import tpu as pltpu

# ---- model dimensions ----
B, T, D = 2, 16, 64        # batch, time, model size
H = 4                      # attention heads
DK = D // H                # per-head dim
DFF = 256                  # feed-forward hidden size
K = 7                      # depthwise conv kernel size (odd)
PAD = (K - 1) // 2
LN_EPS = 1e-12             # espnet LayerNorm eps
BN_EPS = 1e-5              # BatchNorm1d eps (inference, running stats)
NEG_INF = -1e30

# ---- packed-slab layout (all WD segment starts / widths are multiples of 128 lanes) ----
# WD: (D, WD_COLS) bf16 — weight matrices with contracting dim D, zero-padded per segment.
C_MAC1 = 0                  # mac_w1              width 256
C_FF1 = 256                 # ff_w1               width 256
C_PW1 = 512                 # pw1: a@+0, gate@+128 width 256
C_QKV = 768                 # q@+0, k@+128, v@+256 width 384
C_WO = 1152                 # wo@+0               width 128
C_PW2 = 1280                # pw2@+0              width 128
WD_COLS = 1408
# WF: (DFF, 256) bf16 — mac_w2 @ col 0, ff_w2 @ col 128 (each padded to 128 lanes).
C_MACW2, C_FFW2 = 0, 128
# VEC: (VEC_ROWS, DFF) f32 — bias rows, final-LN affine, BN-folded depthwise weights.
(R_MAC_B1, R_FF_B1, R_PW1_B, R_Q_B, R_K_B, R_V_B, R_WO_B,
 R_MAC_B2, R_FF_B2, R_PW2_B, R_DW_B, R_LNF_G, R_LNF_B) = range(13)
R_DW_W = 16                 # sublane-aligned start of the (K, D) depthwise block
VEC_ROWS = 24


def conformer_layer_kernel(lens_ref, x_ref, wd_ref, wf_ref, vec_ref, o_ref):
    b = pl.program_id(0)
    x = x_ref[...].astype(jnp.float32)                      # (T, D) — this batch only
    length = lens_ref[b]                                    # valid key length (SMEM scalar)

    def sigmoid(z):                                          # one EUP tanh, exact
        return 0.5 * jnp.tanh(0.5 * z) + 0.5

    def swish(z):
        return z * sigmoid(z)

    def norm(z):                                             # LN core; affine folded downstream
        mu = jnp.mean(z, axis=-1, keepdims=True)
        var = jnp.mean(jnp.square(z - mu), axis=-1, keepdims=True)
        return (z - mu) * lax.rsqrt(var + LN_EPS)

    def mm(a, c0, n):                                        # a @ WD[:, c0:c0+n], aligned slice
        return jnp.dot(a.astype(jnp.bfloat16), wd_ref[:, c0:c0 + n],
                       preferred_element_type=jnp.float32)

    def mmf(a, c0):                                          # a @ WF[:, c0:c0+128] -> first D cols
        return jnp.dot(a.astype(jnp.bfloat16), wf_ref[:, c0:c0 + 128],
                       preferred_element_type=jnp.float32)[:, :D]

    def vrow(r, n):
        return vec_ref[r:r + 1, 0:n]                         # (1, n) f32 bias row

    # ---- macaron feed-forward ----
    h = swish(mm(norm(x), C_MAC1, DFF) + vrow(R_MAC_B1, DFF))
    x = x + mmf(h, C_MACW2) + vrow(R_MAC_B2, D)

    # ---- multi-head self-attention (pos_emb=None branch) ----
    zn = norm(x)
    qkv = mm(zn, C_QKV, 384)                                 # (T, 384); q/k/v lane-aligned
    q = qkv[:, 0:D] + vrow(R_Q_B, D)
    k = qkv[:, 128:128 + D] + vrow(R_K_B, D)
    v = qkv[:, 256:256 + D] + vrow(R_V_B, D)

    # heads -> leading batch dim; two batched MXU dots replace 2*H tiny dots + transposes
    q_t = jnp.stack([q[:, hh * DK:(hh + 1) * DK] for hh in range(H)], 0).astype(jnp.bfloat16)
    k_t = jnp.stack([k[:, hh * DK:(hh + 1) * DK] for hh in range(H)], 0).astype(jnp.bfloat16)
    v_t = jnp.stack([v[:, hh * DK:(hh + 1) * DK] for hh in range(H)], 0).astype(jnp.bfloat16)

    s = jnp.einsum("hqd,hkd->hqk", q_t, k_t,
                   preferred_element_type=jnp.float32) * (1.0 / math.sqrt(DK))   # (H, T, T)
    invalid = lax.broadcasted_iota(jnp.int32, (T, T), 1) >= length               # key padding
    s = jnp.where(invalid[None], NEG_INF, s)
    m = jnp.max(s, axis=-1, keepdims=True)
    e = jnp.exp(s - m)
    attn = e * pl.reciprocal(jnp.sum(e, axis=-1, keepdims=True), approx=True)
    attn = jnp.where(invalid[None], 0.0, attn)               # espnet post-softmax fill

    ctx_h = jnp.einsum("hqk,hkd->hqd", attn.astype(jnp.bfloat16), v_t,
                       preferred_element_type=jnp.float32)   # (H, T, DK)
    ctx = jnp.concatenate([ctx_h[hh] for hh in range(H)], axis=-1)               # (T, D)
    x = x + mm(ctx, C_WO, 128)[:, :D] + vrow(R_WO_B, D)

    # ---- convolution module: pw1 -> GLU -> depthwise (BN folded) -> swish -> pw2 ----
    y = mm(norm(x), C_PW1, 256) + vrow(R_PW1_B, 256)         # (T, 256)
    y = y[:, 0:D] * sigmoid(y[:, 128:128 + D])               # GLU, both halves lane-aligned
    dw = vec_ref[R_DW_W:R_DW_W + K, 0:D]                     # (K, D), sublane-aligned start
    yp = jnp.concatenate([jnp.zeros((PAD, D), jnp.float32), y,
                          jnp.zeros((PAD, D), jnp.float32)], axis=0)             # (T+2*PAD, D)
    acc = jnp.zeros((T, D), jnp.float32)
    for kk in range(K):                                      # static taps, static slices
        acc = acc + yp[kk:kk + T, :] * dw[kk:kk + 1, :]
    yc = swish(acc + vrow(R_DW_B, D))
    x = x + mm(yc, C_PW2, 128)[:, :D] + vrow(R_PW2_B, D)

    # ---- feed-forward ----
    h = swish(mm(norm(x), C_FF1, DFF) + vrow(R_FF_B1, DFF))
    x = x + mmf(h, C_FFW2) + vrow(R_FF_B2, D)

    # ---- final LayerNorm (affine kept in-kernel) ----
    out = norm(x) * vrow(R_LNF_G, D) + vrow(R_LNF_B, D)
    o_ref[...] = out.astype(o_ref.dtype)


def fold_params(p):
    """Fold LN affines into the following weights/biases and BN into the depthwise conv,
    then pack everything into three lane/sublane-aligned slabs (exact at inference)."""
    g, b = p["ln_g"], p["ln_b"]

    mac_w1 = g[0][:, None] * p["mac_w1"]
    mac_b1 = b[0] @ p["mac_w1"] + p["mac_b1"][0]

    wq = g[1][:, None] * p["wq"]
    wk = g[1][:, None] * p["wk"]
    wv = g[1][:, None] * p["wv"]
    bq = b[1] @ p["wq"] + p["ab"][0]
    bk = b[1] @ p["wk"] + p["ab"][1]
    bv = b[1] @ p["wv"] + p["ab"][2]
    wo, bo = p["wo"], p["ab"][3]

    pw1_w = g[2][:, None] * p["pw1_w"]
    pw1_b = b[2] @ p["pw1_w"] + p["pw1_b"][0]
    gamma, beta, mean, var = p["bn"][0], p["bn"][1], p["bn"][2], p["bn"][3]
    scale = gamma / jnp.sqrt(var + BN_EPS)
    dw_w = p["dw_w"] * scale[None, :]
    dw_b = p["dw_b"][0] * scale + (beta - mean * scale)
    pw2_w, pw2_b = p["pw2_w"], p["pw2_b"][0]

    ff_w1 = g[3][:, None] * p["ff_w1"]
    ff_b1 = b[3] @ p["ff_w1"] + p["ff_b1"][0]
    mac_w2, mac_b2 = p["mac_w2"], p["mac_b2"][0]
    ff_w2, ff_b2 = p["ff_w2"], p["ff_b2"][0]
    lnf_g, lnf_b = g[4], b[4]

    # WD: (D, 1408) bf16 — every segment starts at a multiple of 128 lanes.
    zcol = jnp.zeros((D, D), jnp.float32)                    # (64, 64) zero padding block
    seg_pw1 = jnp.concatenate([pw1_w[:, :D], zcol, pw1_w[:, D:], zcol], axis=1)   # (D, 256)
    seg_qkv = jnp.concatenate([wq, zcol, wk, zcol, wv, zcol], axis=1)             # (D, 384)
    seg_wo = jnp.concatenate([wo, zcol], axis=1)                                  # (D, 128)
    seg_pw2 = jnp.concatenate([pw2_w, zcol], axis=1)                              # (D, 128)
    WD = jnp.concatenate([mac_w1, ff_w1, seg_pw1, seg_qkv, seg_wo, seg_pw2],
                         axis=1).astype(jnp.bfloat16)

    # WF: (DFF, 256) bf16 — mac_w2 @ col 0, ff_w2 @ col 128.
    zf = jnp.zeros((DFF, D), jnp.float32)
    WF = jnp.concatenate([mac_w2, zf, ff_w2, zf], axis=1).astype(jnp.bfloat16)

    def row(vv):
        return jnp.pad(vv, (0, DFF - vv.shape[0]))[None, :].astype(jnp.float32)

    pw1_b_pad = jnp.concatenate([pw1_b[:D], jnp.zeros((D,), jnp.float32),
                                 pw1_b[D:], jnp.zeros((D,), jnp.float32)])
    zero_row = jnp.zeros((1, DFF), jnp.float32)
    VEC = jnp.concatenate(
        [row(mac_b1), row(ff_b1), row(pw1_b_pad),
         row(bq), row(bk), row(bv), row(bo),
         row(mac_b2), row(ff_b2), row(pw2_b), row(dw_b),
         row(lnf_g), row(lnf_b),
         zero_row, zero_row, zero_row]                        # pad -> dw block starts at row 16
        + [row(dw_w[kk]) for kk in range(K)]
        + [zero_row], axis=0)                                 # (24, 256)
    return WD, WF, VEC


def conformer_layer(x, mask, params):
    Bx, Tx, Dx = x.shape
    assert (Tx, Dx) == (T, D)
    # espnet key-padding masks are prefix masks -> recover per-batch lengths for SMEM prefetch.
    lengths = jnp.sum(mask[:, 0, :].astype(jnp.int32), axis=-1)
    wd, wf, vec = fold_params(params)
    xf = x.reshape(Bx * Tx, Dx)

    flops = 2 * Bx * Tx * (D * WD_COLS + DFF * 2 * D) + 4 * Bx * H * Tx * Tx * DK
    bytes_accessed = wd.size * 2 + wf.size * 2 + vec.size * 4 + 2 * xf.size * 4
    transcendentals = Bx * Tx * (2 * DFF + 3 * D) + Bx * H * Tx * Tx

    out = pl.pallas_call(
        conformer_layer_kernel,
        out_shape=jax.ShapeDtypeStruct((Bx * Tx, Dx), x.dtype),
        grid_spec=pltpu.PrefetchScalarGridSpec(
            num_scalar_prefetch=1,
            grid=(Bx,),                                       # one batch per grid step
            in_specs=[
                pl.BlockSpec((Tx, Dx), lambda b, lens: (b, 0)),
                pl.BlockSpec(wd.shape, lambda b, lens: (0, 0)),   # resident, fetched once
                pl.BlockSpec(wf.shape, lambda b, lens: (0, 0)),
                pl.BlockSpec(vec.shape, lambda b, lens: (0, 0)),
            ],
            out_specs=pl.BlockSpec((Tx, Dx), lambda b, lens: (b, 0)),
        ),
        compiler_params=pltpu.CompilerParams(dimension_semantics=("parallel",)),
        cost_estimate=pl.CostEstimate(flops=flops, transcendentals=transcendentals,
                                      bytes_accessed=bytes_accessed),
    )(lengths, xf, wd, wf, vec)
    return out.reshape(Bx, Tx, Dx), mask


def init_params(key):
    keys = jax.random.split(key, 32)
    it = iter(keys)

    def nrm(shape, scale):
        return (scale * jax.random.normal(next(it), shape, dtype=jnp.float32)).astype(jnp.float32)

    def w(shape, fan_in):
        return nrm(shape, 1.0 / math.sqrt(fan_in))

    p = {}
    p["ln_g"] = 1.0 + nrm((5, D), 0.05)
    p["ln_b"] = nrm((5, D), 0.02)
    p["wq"] = w((D, D), D)
    p["wk"] = w((D, D), D)
    p["wv"] = w((D, D), D)
    p["wo"] = w((D, D), D)
    p["ab"] = nrm((4, D), 0.02)
    p["mac_w1"] = w((D, DFF), D)
    p["mac_b1"] = nrm((1, DFF), 0.02)
    p["mac_w2"] = w((DFF, D), DFF)
    p["mac_b2"] = nrm((1, D), 0.02)
    p["ff_w1"] = w((D, DFF), D)
    p["ff_b1"] = nrm((1, DFF), 0.02)
    p["ff_w2"] = w((DFF, D), DFF)
    p["ff_b2"] = nrm((1, D), 0.02)
    p["pw1_w"] = w((D, 2 * D), D)
    p["pw1_b"] = nrm((1, 2 * D), 0.02)
    p["dw_w"] = w((K, D), K)
    p["dw_b"] = nrm((1, D), 0.02)
    bn_gamma = 1.0 + nrm((1, D), 0.05)
    bn_beta = nrm((1, D), 0.02)
    bn_mean = nrm((1, D), 0.1)
    bn_var = 1.0 + jnp.abs(nrm((1, D), 0.1))
    p["bn"] = jnp.concatenate([bn_gamma, bn_beta, bn_mean, bn_var], axis=0)
    p["pw2_w"] = w((D, D), D)
    p["pw2_b"] = nrm((1, D), 0.02)
    return p


def reference(x, mask, p):
    """Plain-JAX f32 reference of the module forward (unfolded params)."""
    hi = lax.Precision.HIGHEST

    def sigmoid(z):
        return 1.0 / (1.0 + jnp.exp(-z))

    def ln(z, i):
        mu = z.mean(-1, keepdims=True)
        var = ((z - mu) ** 2).mean(-1, keepdims=True)
        return (z - mu) / jnp.sqrt(var + LN_EPS) * p["ln_g"][i] + p["ln_b"][i]

    def ff(z, w1, b1, w2, b2):
        h = jnp.einsum("btd,df->btf", z, w1, precision=hi) + b1
        h = h * sigmoid(h)
        return jnp.einsum("btf,fd->btd", h, w2, precision=hi) + b2

    def mha(z):
        q = jnp.einsum("btd,de->bte", z, p["wq"], precision=hi) + p["ab"][0]
        k = jnp.einsum("btd,de->bte", z, p["wk"], precision=hi) + p["ab"][1]
        v = jnp.einsum("btd,de->bte", z, p["wv"], precision=hi) + p["ab"][2]
        q = q.reshape(B, T, H, DK).transpose(0, 2, 1, 3)
        k = k.reshape(B, T, H, DK).transpose(0, 2, 1, 3)
        v = v.reshape(B, T, H, DK).transpose(0, 2, 1, 3)
        s = jnp.einsum("bhqe,bhke->bhqk", q, k, precision=hi) / math.sqrt(DK)
        inval = (mask[:, None, :, :] == 0)
        s = jnp.where(inval, NEG_INF, s)
        pa = jax.nn.softmax(s, axis=-1)
        pa = jnp.where(inval, 0.0, pa)
        ctx = jnp.einsum("bhqk,bhke->bhqe", pa, v, precision=hi)
        ctx = ctx.transpose(0, 2, 1, 3).reshape(B, T, D)
        return jnp.einsum("btd,de->bte", ctx, p["wo"], precision=hi) + p["ab"][3]

    def conv(z):
        y = jnp.einsum("btd,de->bte", z, p["pw1_w"], precision=hi) + p["pw1_b"]
        a, g = y[..., :D], y[..., D:]
        y = a * sigmoid(g)
        yp = jnp.pad(y, ((0, 0), (PAD, PAD), (0, 0)))
        acc = jnp.zeros_like(y)
        for kk in range(K):
            acc = acc + yp[:, kk:kk + T, :] * p["dw_w"][kk]
        y = acc + p["dw_b"]
        gamma, beta, mean, var = p["bn"][0], p["bn"][1], p["bn"][2], p["bn"][3]
        y = (y - mean) / jnp.sqrt(var + BN_EPS) * gamma + beta
        y = y * sigmoid(y)
        return jnp.einsum("btd,de->bte", y, p["pw2_w"], precision=hi) + p["pw2_b"]

    z = x + ff(ln(x, 0), p["mac_w1"], p["mac_b1"], p["mac_w2"], p["mac_b2"])
    z = z + mha(ln(z, 1))
    z = z + conv(ln(z, 2))
    z = z + ff(ln(z, 3), p["ff_w1"], p["ff_b1"], p["ff_w2"], p["ff_b2"])
    return ln(z, 4)


if __name__ == "__main__":
    key = jax.random.PRNGKey(0)
    kx, kp = jax.random.split(key)
    x = jax.random.normal(kx, (B, T, D), dtype=jnp.float32)
    # mask: (B, 1, T) key-padding mask (1 = valid), espnet convention
    lengths = jnp.array([T, T - 3], dtype=jnp.int32)
    t_idx = jnp.arange(T, dtype=jnp.int32)[None, :]
    mask = (t_idx < lengths[:, None]).astype(jnp.int32)[:, None, :]

    params = init_params(kp)

    out, out_mask = conformer_layer(x, mask, params)
    out = jax.block_until_ready(out)

    ref = reference(x, mask, params)
    max_err = float(jnp.max(jnp.abs(out - ref)))

    assert out.shape == (B, T, D)
    assert bool(jnp.all(jnp.isfinite(out)))
    assert max_err < 1e-1, f"max abs err vs reference: {max_err}"
    print("KERNEL_OK")
</pallas_src>

<mosaic_0001>
module attributes {stable_mosaic.version = 11 : i64} {
  func.func @conformer_layer_kernel(%arg0: i32, %arg1: memref<2xi32, #tpu.memory_space<smem>>, %arg2: memref<16x64xf32, #tpu.memory_space<vmem>>, %arg3: memref<64x1408xbf16, #tpu.memory_space<vmem>>, %arg4: memref<256x256xbf16, #tpu.memory_space<vmem>>, %arg5: memref<24x256xf32, #tpu.memory_space<vmem>>, %arg6: memref<16x64xf32, #tpu.memory_space<vmem>>) attributes {dimension_semantics = [#tpu.dimension_semantics<parallel>], iteration_bounds = array<i64: 2>, scalar_prefetch = 1 : i64, scratch_operands = 0 : i64, tpu.core_type = #tpu.core_type<tc>, window_params = [{transform_indices = @transform_0, window_bounds = array<i64: 16, 64>}, {pipeline_mode = #tpu.pipeline_mode<synchronous>, transform_indices = @transform_1, window_bounds = array<i64: 64, 1408>}, {pipeline_mode = #tpu.pipeline_mode<synchronous>, transform_indices = @transform_2, window_bounds = array<i64: 256, 256>}, {pipeline_mode = #tpu.pipeline_mode<synchronous>, transform_indices = @transform_3, window_bounds = array<i64: 24, 256>}, {transform_indices = @transform_4, window_bounds = array<i64: 16, 64>}]} {
    %c0 = arith.constant 0 : index
    %c0_0 = arith.constant 0 : index
    %0 = vector.load %arg2[%c0, %c0_0] : memref<16x64xf32, #tpu.memory_space<vmem>>, vector<16x64xf32>
    %1 = arith.index_cast %arg0 : i32 to index
    %2 = memref.load %arg1[%1] : memref<2xi32, #tpu.memory_space<smem>>
    %cst = arith.constant dense<0.000000e+00> : vector<16xf32>
    %3 = vector.multi_reduction <add>, %0, %cst [1] : vector<16x64xf32> to vector<16xf32>
    %4 = vector.shape_cast %3 : vector<16xf32> to vector<16x1xf32>
    %cst_1 = arith.constant 6.400000e+01 : f32
    %5 = vector.broadcast %cst_1 : f32 to vector<16x1xf32>
    %6 = arith.divf %4, %5 : vector<16x1xf32>
    %7 = vector.broadcast %6 : vector<16x1xf32> to vector<16x64xf32>
    %8 = arith.subf %0, %7 : vector<16x64xf32>
    %9 = arith.mulf %8, %8 : vector<16x64xf32>
    %cst_2 = arith.constant dense<0.000000e+00> : vector<16xf32>
    %10 = vector.multi_reduction <add>, %9, %cst_2 [1] : vector<16x64xf32> to vector<16xf32>
    %11 = vector.shape_cast %10 : vector<16xf32> to vector<16x1xf32>
    %cst_3 = arith.constant 6.400000e+01 : f32
    %12 = vector.broadcast %cst_3 : f32 to vector<16x1xf32>
    %13 = arith.divf %11, %12 : vector<16x1xf32>
    %14 = vector.broadcast %6 : vector<16x1xf32> to vector<16x64xf32>
    %15 = arith.subf %0, %14 : vector<16x64xf32>
    %cst_4 = arith.constant 9.99999996E-13 : f32
    %16 = vector.broadcast %cst_4 : f32 to vector<16x1xf32>
    %17 = arith.addf %13, %16 : vector<16x1xf32>
    %18 = math.rsqrt %17 : vector<16x1xf32>
    %19 = vector.broadcast %18 : vector<16x1xf32> to vector<16x64xf32>
    %20 = arith.mulf %15, %19 : vector<16x64xf32>
    %21 = arith.truncf %20 : vector<16x64xf32> to vector<16x64xbf16>
    %c0_5 = arith.constant 0 : index
    %c0_6 = arith.constant 0 : index
    %22 = vector.load %arg3[%c0_5, %c0_6] : memref<64x1408xbf16, #tpu.memory_space<vmem>>, vector<64x256xbf16>
    %cst_7 = arith.constant dense<0.000000e+00> : vector<16x256xf32>
    %23 = tpu.matmul %21, %22, %cst_7 {dimension_numbers = #tpu.dot_dimension_numbers<[1], [0], [0], [1], [0, 0, 1, 1], [], []>} : vector<16x64xbf16>, vector<64x256xbf16>, vector<16x256xf32> -> vector<16x256xf32>
    %c0_8 = arith.constant 0 : index
    %c0_9 = arith.constant 0 : index
    %24 = vector.load %arg5[%c0_8, %c0_9] : memref<24x256xf32, #tpu.memory_space<vmem>>, vector<1x256xf32>
    %25 = vector.broadcast %24 : vector<1x256xf32> to vector<16x256xf32>
    %26 = arith.addf %23, %25 : vector<16x256xf32>
    %cst_10 = arith.constant 5.000000e-01 : f32
    %27 = vector.broadcast %cst_10 : f32 to vector<16x256xf32>
    %28 = arith.mulf %27, %26 : vector<16x256xf32>
    %29 = math.tanh %28 : vector<16x256xf32>
    %cst_11 = arith.constant 5.000000e-01 : f32
    %30 = vector.broadcast %cst_11 : f32 to vector<16x256xf32>
    %31 = arith.mulf %30, %29 : vector<16x256xf32>
    %cst_12 = arith.constant 5.000000e-01 : f32
    %32 = vector.broadcast %cst_12 : f32 to vector<16x256xf32>
    %33 = arith.addf %31, %32 : vector<16x256xf32>
    %34 = arith.mulf %26, %33 : vector<16x256xf32>
    %35 = arith.truncf %34 : vector<16x256xf32> to vector<16x256xbf16>
    %c0_13 = arith.constant 0 : index
    %c0_14 = arith.constant 0 : index
    %36 = vector.load %arg4[%c0_13, %c0_14] : memref<256x256xbf16, #tpu.memory_space<vmem>>, vector<256x128xbf16>
    %cst_15 = arith.constant dense<0.000000e+00> : vector<16x128xf32>
    %37 = tpu.matmul %35, %36, %cst_15 {dimension_numbers = #tpu.dot_dimension_numbers<[1], [0], [0], [1], [0, 0, 1, 1], [], []>} : vector<16x256xbf16>, vector<256x128xbf16>, vector<16x128xf32> -> vector<16x128xf32>
    %38 = vector.extract_strided_slice %37 {offsets = [0, 0], sizes = [16, 64], strides = [1, 1]} : vector<16x128xf32> to vector<16x64xf32>
    %39 = arith.addf %0, %38 : vector<16x64xf32>
    %c7 = arith.constant 7 : index
    %c0_16 = arith.constant 0 : index
    %40 = vector.load %arg5[%c7, %c0_16] : memref<24x256xf32, #tpu.memory_space<vmem>>, vector<1x64xf32>
    %41 = vector.broadcast %40 : vector<1x64xf32> to vector<16x64xf32>
    %42 = arith.addf %39, %41 : vector<16x64xf32>
    %cst_17 = arith.constant dense<0.000000e+00> : vector<16xf32>
    %43 = vector.multi_reduction <add>, %42, %cst_17 [1] : vector<16x64xf32> to vector<16xf32>
    %44 = vector.shape_cast %43 : vector<16xf32> to vector<16x1xf32>
    %cst_18 = arith.constant 6.400000e+01 : f32
    %45 = vector.broadcast %cst_18 : f32 to vector<16x1xf32>
    %46 = arith.divf %44, %45 : vector<16x1xf32>
    %47 = vector.broadcast %46 : vector<16x1xf32> to vector<16x64xf32>
    %48 = arith.subf %42, %47 : vector<16x64xf32>
    %49 = arith.mulf %48, %48 : vector<16x64xf32>
    %cst_19 = arith.constant dense<0.000000e+00> : vector<16xf32>
    %50 = vector.multi_reduction <add>, %49, %cst_19 [1] : vector<16x64xf32> to vector<16xf32>
    %51 = vector.shape_cast %50 : vector<16xf32> to vector<16x1xf32>
    %cst_20 = arith.constant 6.400000e+01 : f32
    %52 = vector.broadcast %cst_20 : f32 to vector<16x1xf32>
    %53 = arith.divf %51, %52 : vector<16x1xf32>
    %54 = vector.broadcast %46 : vector<16x1xf32> to vector<16x64xf32>
    %55 = arith.subf %42, %54 : vector<16x64xf32>
    %cst_21 = arith.constant 9.99999996E-13 : f32
    %56 = vector.broadcast %cst_21 : f32 to vector<16x1xf32>
    %57 = arith.addf %53, %56 : vector<16x1xf32>
    %58 = math.rsqrt %57 : vector<16x1xf32>
    %59 = vector.broadcast %58 : vector<16x1xf32> to vector<16x64xf32>
    %60 = arith.mulf %55, %59 : vector<16x64xf32>
    %61 = arith.truncf %60 : vector<16x64xf32> to vector<16x64xbf16>
    %c0_22 = arith.constant 0 : index
    %c768 = arith.constant 768 : index
    %62 = vector.load %arg3[%c0_22, %c768] : memref<64x1408xbf16, #tpu.memory_space<vmem>>, vector<64x384xbf16>
    %cst_23 = arith.constant dense<0.000000e+00> : vector<16x384xf32>
    %63 = tpu.matmul %61, %62, %cst_23 {dimension_numbers = #tpu.dot_dimension_numbers<[1], [0], [0], [1], [0, 0, 1, 1], [], []>} : vector<16x64xbf16>, vector<64x384xbf16>, vector<16x384xf32> -> vector<16x384xf32>
    %64 = vector.extract_strided_slice %63 {offsets = [0, 0], sizes = [16, 64], strides = [1, 1]} : vector<16x384xf32> to vector<16x64xf32>
    %c3 = arith.constant 3 : index
    %c0_24 = arith.constant 0 : index
    %65 = vector.load %arg5[%c3, %c0_24] : memref<24x256xf32, #tpu.memory_space<vmem>>, vector<1x64xf32>
    %66 = vector.broadcast %65 : vector<1x64xf32> to vector<16x64xf32>
    %67 = arith.addf %64, %66 : vector<16x64xf32>
    %68 = vector.extract_strided_slice %63 {offsets = [0, 128], sizes = [16, 64], strides = [1, 1]} : vector<16x384xf32> to vector<16x64xf32>
    %c4 = arith.constant 4 : index
    %c0_25 = arith.constant 0 : index
    %69 = vector.load %arg5[%c4, %c0_25] : memref<24x256xf32, #tpu.memory_space<vmem>>, vector<1x64xf32>
    %70 = vector.broadcast %69 : vector<1x64xf32> to vector<16x64xf32>
    %71 = arith.addf %68, %70 : vector<16x64xf32>
    %72 = vector.extract_strided_slice %63 {offsets = [0, 256], sizes = [16, 64], strides = [1, 1]} : vector<16x384xf32> to vector<16x64xf32>
    %c5 = arith.constant 5 : index
    %c0_26 = arith.constant 0 : index
    %73 = vector.load %arg5[%c5, %c0_26] : memref<24x256xf32, #tpu.memory_space<vmem>>, vector<1x64xf32>
    %74 = vector.broadcast %73 : vector<1x64xf32> to vector<16x64xf32>
    %75 = arith.addf %72, %74 : vector<16x64xf32>
    %76 = vector.extract_strided_slice %67 {offsets = [0, 0], sizes = [16, 16], strides = [1, 1]} : vector<16x64xf32> to vector<16x16xf32>
    %77 = vector.extract_strided_slice %67 {offsets = [0, 16], sizes = [16, 16], strides = [1, 1]} : vector<16x64xf32> to vector<16x16xf32>
    %78 = vector.extract_strided_slice %67 {offsets = [0, 32], sizes = [16, 16], strides = [1, 1]} : vector<16x64xf32> to vector<16x16xf32>
    %79 = vector.extract_strided_slice %67 {offsets = [0, 48], sizes = [16, 16], strides = [1, 1]} : vector<16x64xf32> to vector<16x16xf32>
    %80 = vector.shape_cast %76 : vector<16x16xf32> to vector<1x16x16xf32>
    %81 = vector.shape_cast %77 : vector<16x16xf32> to vector<1x16x16xf32>
    %82 = vector.shape_cast %78 : vector<16x16xf32> to vector<1x16x16xf32>
    %83 = vector.shape_cast %79 : vector<16x16xf32> to vector<1x16x16xf32>
    %84 = tpu.concatenate %80, %81, %82, %83 in 0 : vector<1x16x16xf32>, vector<1x16x16xf32>, vector<1x16x16xf32>, vector<1x16x16xf32> -> vector<4x16x16xf32>
    %85 = arith.truncf %84 : vector<4x16x16xf32> to vector<4x16x16xbf16>
    %86 = vector.extract_strided_slice %71 {offsets = [0, 0], sizes = [16, 16], strides = [1, 1]} : vector<16x64xf32> to vector<16x16xf32>
    %87 = vector.extract_strided_slice %71 {offsets = [0, 16], sizes = [16, 16], strides = [1, 1]} : vector<16x64xf32> to vector<16x16xf32>
    %88 = vector.extract_strided_slice %71 {offsets = [0, 32], sizes = [16, 16], strides = [1, 1]} : vector<16x64xf32> to vector<16x16xf32>
    %89 = vector.extract_strided_slice %71 {offsets = [0, 48], sizes = [16, 16], strides = [1, 1]} : vector<16x64xf32> to vector<16x16xf32>
    %90 = vector.shape_cast %86 : vector<16x16xf32> to vector<1x16x16xf32>
    %91 = vector.shape_cast %87 : vector<16x16xf32> to vector<1x16x16xf32>
    %92 = vector.shape_cast %88 : vector<16x16xf32> to vector<1x16x16xf32>
    %93 = vector.shape_cast %89 : vector<16x16xf32> to vector<1x16x16xf32>
    %94 = tpu.concatenate %90, %91, %92, %93 in 0 : vector<1x16x16xf32>, vector<1x16x16xf32>, vector<1x16x16xf32>, vector<1x16x16xf32> -> vector<4x16x16xf32>
    %95 = arith.truncf %94 : vector<4x16x16xf32> to vector<4x16x16xbf16>
    %96 = vector.extract_strided_slice %75 {offsets = [0, 0], sizes = [16, 16], strides = [1, 1]} : vector<16x64xf32> to vector<16x16xf32>
    %97 = vector.extract_strided_slice %75 {offsets = [0, 16], sizes = [16, 16], strides = [1, 1]} : vector<16x64xf32> to vector<16x16xf32>
    %98 = vector.extract_strided_slice %75 {offsets = [0, 32], sizes = [16, 16], strides = [1, 1]} : vector<16x64xf32> to vector<16x16xf32>
    %99 = vector.extract_strided_slice %75 {offsets = [0, 48], sizes = [16, 16], strides = [1, 1]} : vector<16x64xf32> to vector<16x16xf32>
    %100 = vector.shape_cast %96 : vector<16x16xf32> to vector<1x16x16xf32>
    %101 = vector.shape_cast %97 : vector<16x16xf32> to vector<1x16x16xf32>
    %102 = vector.shape_cast %98 : vector<16x16xf32> to vector<1x16x16xf32>
    %103 = vector.shape_cast %99 : vector<16x16xf32> to vector<1x16x16xf32>
    %104 = tpu.concatenate %100, %101, %102, %103 in 0 : vector<1x16x16xf32>, vector<1x16x16xf32>, vector<1x16x16xf32>, vector<1x16x16xf32> -> vector<4x16x16xf32>
    %105 = arith.truncf %104 : vector<4x16x16xf32> to vector<4x16x16xbf16>
    "tpu.trace_start"() <{level = 10 : i32, message = "hqd,hkd->hqk"}> : () -> ()
    %cst_27 = arith.constant dense<0.000000e+00> : vector<4x16x16xf32>
    %106 = tpu.matmul %85, %95, %cst_27 {dimension_numbers = #tpu.dot_dimension_numbers<[2], [2], [1], [1], [0, 0, 0, 1, 1, 1], [0], [0]>} : vector<4x16x16xbf16>, vector<4x16x16xbf16>, vector<4x16x16xf32> -> vector<4x16x16xf32>
    "tpu.trace_stop"() : () -> ()
    %cst_28 = arith.constant 2.500000e-01 : f32
    %107 = vector.broadcast %cst_28 : f32 to vector<4x16x16xf32>
    %108 = arith.mulf %106, %107 : vector<4x16x16xf32>
    %109 = tpu.iota {dimensions = array<i32: 1>} : vector<16x16xi32>
    %110 = vector.broadcast %2 : i32 to vector<16x16xi32>
    %111 = arith.cmpi sge, %109, %110 : vector<16x16xi32>
    %112 = vector.shape_cast %111 : vector<16x16xi1> to vector<1x16x16xi1>
    %cst_29 = arith.constant -1.000000e+30 : f32
    %113 = vector.shape_cast %112 : vector<1x16x16xi1> to vector<1x16x16xi1>
    %114 = vector.broadcast %113 : vector<1x16x16xi1> to vector<4x16x16xi1>
    %115 = vector.broadcast %cst_29 : f32 to vector<4x16x16xf32>
    %116 = arith.select %114, %115, %108 : vector<4x16x16xi1>, vector<4x16x16xf32>
    %cst_30 = arith.constant dense<0xFF800000> : vector<4x16xf32>
    %117 = vector.multi_reduction <maximumf>, %116, %cst_30 [2] : vector<4x16x16xf32> to vector<4x16xf32>
    %118 = vector.shape_cast %117 : vector<4x16xf32> to vector<4x16x1xf32>
    %119 = vector.broadcast %118 : vector<4x16x1xf32> to vector<4x16x16xf32>
    %120 = arith.subf %116, %119 : vector<4x16x16xf32>
    %121 = math.exp %120 : vector<4x16x16xf32>
    %cst_31 = arith.constant dense<0.000000e+00> : vector<4x16xf32>
    %122 = vector.multi_reduction <add>, %121, %cst_31 [2] : vector<4x16x16xf32> to vector<4x16xf32>
    %123 = vector.shape_cast %122 : vector<4x16xf32> to vector<4x16x1xf32>
    %124 = tpu.reciprocal %123 {approx = true} : vector<4x16x1xf32> -> vector<4x16x1xf32>
    %125 = vector.broadcast %124 : vector<4x16x1xf32> to vector<4x16x16xf32>
    %126 = arith.mulf %121, %125 : vector<4x16x16xf32>
    %127 = vector.shape_cast %111 : vector<16x16xi1> to vector<1x16x16xi1>
    %cst_32 = arith.constant 0.000000e+00 : f32
    %128 = vector.shape_cast %127 : vector<1x16x16xi1> to vector<1x16x16xi1>
    %129 = vector.broadcast %128 : vector<1x16x16xi1> to vector<4x16x16xi1>
    %130 = vector.broadcast %cst_32 : f32 to vector<4x16x16xf32>
    %131 = arith.select %129, %130, %126 : vector<4x16x16xi1>, vector<4x16x16xf32>
    %132 = arith.truncf %131 : vector<4x16x16xf32> to vector<4x16x16xbf16>
    "tpu.trace_start"() <{level = 10 : i32, message = "hqk,hkd->hqd"}> : () -> ()
    %cst_33 = arith.constant dense<0.000000e+00> : vector<4x16x16xf32>
    %133 = tpu.matmul %132, %105, %cst_33 {dimension_numbers = #tpu.dot_dimension_numbers<[2], [1], [1], [2], [0, 0, 0, 1, 1, 2], [0], [0]>} : vector<4x16x16xbf16>, vector<4x16x16xbf16>, vector<4x16x16xf32> -> vector<4x16x16xf32>
    "tpu.trace_stop"() : () -> ()
    %134 = vector.extract_strided_slice %133 {offsets = [0, 0, 0], sizes = [1, 16, 16], strides = [1, 1, 1]} : vector<4x16x16xf32> to vector<1x16x16xf32>
    %135 = vector.shape_cast %134 : vector<1x16x16xf32> to vector<16x16xf32>
    %136 = vector.extract_strided_slice %133 {offsets = [1, 0, 0], sizes = [1, 16, 16], strides = [1, 1, 1]} : vector<4x16x16xf32> to vector<1x16x16xf32>
    %137 = vector.shape_cast %136 : vector<1x16x16xf32> to vector<16x16xf32>
    %138 = vector.extract_strided_slice %133 {offsets = [2, 0, 0], sizes = [1, 16, 16], strides = [1, 1, 1]} : vector<4x16x16xf32> to vector<1x16x16xf32>
    %139 = vector.shape_cast %138 : vector<1x16x16xf32> to vector<16x16xf32>
    %140 = vector.extract_strided_slice %133 {offsets = [3, 0, 0], sizes = [1, 16, 16], strides = [1, 1, 1]} : vector<4x16x16xf32> to vector<1x16x16xf32>
    %141 = vector.shape_cast %140 : vector<1x16x16xf32> to vector<16x16xf32>
    %142 = tpu.concatenate %135, %137, %139, %141 in 1 : vector<16x16xf32>, vector<16x16xf32>, vector<16x16xf32>, vector<16x16xf32> -> vector<16x64xf32>
    %143 = arith.truncf %142 : vector<16x64xf32> to vector<16x64xbf16>
    %c0_34 = arith.constant 0 : index
    %c1152 = arith.constant 1152 : index
    %144 = vector.load %arg3[%c0_34, %c1152] : memref<64x1408xbf16, #tpu.memory_space<vmem>>, vector<64x128xbf16>
    %cst_35 = arith.constant dense<0.000000e+00> : vector<16x128xf32>
    %145 = tpu.matmul %143, %144, %cst_35 {dimension_numbers = #tpu.dot_dimension_numbers<[1], [0], [0], [1], [0, 0, 1, 1], [], []>} : vector<16x64xbf16>, vector<64x128xbf16>, vector<16x128xf32> -> vector<16x128xf32>
    %146 = vector.extract_strided_slice %145 {offsets = [0, 0], sizes = [16, 64], strides = [1, 1]} : vector<16x128xf32> to vector<16x64xf32>
    %147 = arith.addf %42, %146 : vector<16x64xf32>
    %c6 = arith.constant 6 : index
    %c0_36 = arith.constant 0 : index
    %148 = vector.load %arg5[%c6, %c0_36] : memref<24x256xf32, #tpu.memory_space<vmem>>, vector<1x64xf32>
    %149 = vector.broadcast %148 : vector<1x64xf32> to vector<16x64xf32>
    %150 = arith.addf %147, %149 : vector<16x64xf32>
    %cst_37 = arith.constant dense<0.000000e+00> : vector<16xf32>
    %151 = vector.multi_reduction <add>, %150, %cst_37 [1] : vector<16x64xf32> to vector<16xf32>
    %152 = vector.shape_cast %151 : vector<16xf32> to vector<16x1xf32>
    %cst_38 = arith.constant 6.400000e+01 : f32
    %153 = vector.broadcast %cst_38 : f32 to vector<16x1xf32>
    %154 = arith.divf %152, %153 : vector<16x1xf32>
    %155 = vector.broadcast %154 : vector<16x1xf32> to vector<16x64xf32>
    %156 = arith.subf %150, %155 : vector<16x64xf32>
    %157 = arith.mulf %156, %156 : vector<16x64xf32>
    %cst_39 = arith.constant dense<0.000000e+00> : vector<16xf32>
    %158 = vector.multi_reduction <add>, %157, %cst_39 [1] : vector<16x64xf32> to vector<16xf32>
    %159 = vector.shape_cast %158 : vector<16xf32> to vector<16x1xf32>
    %cst_40 = arith.constant 6.400000e+01 : f32
    %160 = vector.broadcast %cst_40 : f32 to vector<16x1xf32>
    %161 = arith.divf %159, %160 : vector<16x1xf32>
    %162 = vector.broadcast %154 : vector<16x1xf32> to vector<16x64xf32>
    %163 = arith.subf %150, %162 : vector<16x64xf32>
    %cst_41 = arith.constant 9.99999996E-13 : f32
    %164 = vector.broadcast %cst_41 : f32 to vector<16x1xf32>
    %165 = arith.addf %161, %164 : vector<16x1xf32>
    %166 = math.rsqrt %165 : vector<16x1xf32>
    %167 = vector.broadcast %166 : vector<16x1xf32> to vector<16x64xf32>
    %168 = arith.mulf %163, %167 : vector<16x64xf32>
    %169 = arith.truncf %168 : vector<16x64xf32> to vector<16x64xbf16>
    %c0_42 = arith.constant 0 : index
    %c512 = arith.constant 512 : index
    %170 = vector.load %arg3[%c0_42, %c512] : memref<64x1408xbf16, #tpu.memory_space<vmem>>, vector<64x256xbf16>
    %cst_43 = arith.constant dense<0.000000e+00> : vector<16x256xf32>
    %171 = tpu.matmul %169, %170, %cst_43 {dimension_numbers = #tpu.dot_dimension_numbers<[1], [0], [0], [1], [0, 0, 1, 1], [], []>} : vector<16x64xbf16>, vector<64x256xbf16>, vector<16x256xf32> -> vector<16x256xf32>
    %c2 = arith.constant 2 : index
    %c0_44 = arith.constant 0 : index
    %172 = vector.load %arg5[%c2, %c0_44] : memref<24x256xf32, #tpu.memory_space<vmem>>, vector<1x256xf32>
    %173 = vector.broadcast %172 : vector<1x256xf32> to vector<16x256xf32>
    %174 = arith.addf %171, %173 : vector<16x256xf32>
    %175 = vector.extract_strided_slice %174 {offsets = [0, 0], sizes = [16, 64], strides = [1, 1]} : vector<16x256xf32> to vector<16x64xf32>
    %176 = vector.extract_strided_slice %174 {offsets = [0, 128], sizes = [16, 64], strides = [1, 1]} : vector<16x256xf32> to vector<16x64xf32>
    %cst_45 = arith.constant 5.000000e-01 : f32
    %177 = vector.broadcast %cst_45 : f32 to vector<16x64xf32>
    %178 = arith.mulf %177, %176 : vector<16x64xf32>
    %179 = math.tanh %178 : vector<16x64xf32>
    %cst_46 = arith.constant 5.000000e-01 : f32
    %180 = vector.broadcast %cst_46 : f32 to vector<16x64xf32>
    %181 = arith.mulf %180, %179 : vector<16x64xf32>
    %cst_47 = arith.constant 5.000000e-01 : f32
    %182 = vector.broadcast %cst_47 : f32 to vector<16x64xf32>
    %183 = arith.addf %181, %182 : vector<16x64xf32>
    %184 = arith.mulf %175, %183 : vector<16x64xf32>
    %c16 = arith.constant 16 : index
    %c0_48 = arith.constant 0 : index
    %185 = vector.load %arg5[%c16, %c0_48] : memref<24x256xf32, #tpu.memory_space<vmem>>, vector<7x64xf32>
    %cst_49 = arith.constant 0.000000e+00 : f32
    %186 = vector.broadcast %cst_49 : f32 to vector<3x64xf32>
    %cst_50 = arith.constant 0.000000e+00 : f32
    %187 = vector.broadcast %cst_50 : f32 to vector<3x64xf32>
    %188 = tpu.concatenate %186, %184, %187 in 0 : vector<3x64xf32>, vector<16x64xf32>, vector<3x64xf32> -> vector<22x64xf32>
    %cst_51 = arith.constant 0.000000e+00 : f32
    %189 = vector.broadcast %cst_51 : f32 to vector<16x64xf32>
    %190 = vector.extract_strided_slice %188 {offsets = [0, 0], sizes = [16, 64], strides = [1, 1]} : vector<22x64xf32> to vector<16x64xf32>
    %191 = vector.extract_strided_slice %185 {offsets = [0, 0], sizes = [1, 64], strides = [1, 1]} : vector<7x64xf32> to vector<1x64xf32>
    %192 = vector.broadcast %191 : vector<1x64xf32> to vector<16x64xf32>
    %193 = arith.mulf %190, %192 : vector<16x64xf32>
    %194 = arith.addf %189, %193 : vector<16x64xf32>
    %195 = vector.extract_strided_slice %188 {offsets = [1, 0], sizes = [16, 64], strides = [1, 1]} : vector<22x64xf32> to vector<16x64xf32>
    %196 = vector.extract_strided_slice %185 {offsets = [1, 0], sizes = [1, 64], strides = [1, 1]} : vector<7x64xf32> to vector<1x64xf32>
    %197 = vector.broadcast %196 : vector<1x64xf32> to vector<16x64xf32>
    %198 = arith.mulf %195, %197 : vector<16x64xf32>
    %199 = arith.addf %194, %198 : vector<16x64xf32>
    %200 = vector.extract_strided_slice %188 {offsets = [2, 0], sizes = [16, 64], strides = [1, 1]} : vector<22x64xf32> to vector<16x64xf32>
    %201 = vector.extract_strided_slice %185 {offsets = [2, 0], sizes = [1, 64], strides = [1, 1]} : vector<7x64xf32> to vector<1x64xf32>
    %202 = vector.broadcast %201 : vector<1x64xf32> to vector<16x64xf32>
    %203 = arith.mulf %200, %202 : vector<16x64xf32>
    %204 = arith.addf %199, %203 : vector<16x64xf32>
    %205 = vector.extract_strided_slice %188 {offsets = [3, 0], sizes = [16, 64], strides = [1, 1]} : vector<22x64xf32> to vector<16x64xf32>
    %206 = vector.extract_strided_slice %185 {offsets = [3, 0], sizes = [1, 64], strides = [1, 1]} : vector<7x64xf32> to vector<1x64xf32>
    %207 = vector.broadcast %206 : vector<1x64xf32> to vector<16x64xf32>
    %208 = arith.mulf %205, %207 : vector<16x64xf32>
    %209 = arith.addf %204, %208 : vector<16x64xf32>
    %210 = vector.extract_strided_slice %188 {offsets = [4, 0], sizes = [16, 64], strides = [1, 1]} : vector<22x64xf32> to vector<16x64xf32>
    %211 = vector.extract_strided_slice %185 {offsets = [4, 0], sizes = [1, 64], strides = [1, 1]} : vector<7x64xf32> to vector<1x64xf32>
    %212 = vector.broadcast %211 : vector<1x64xf32> to vector<16x64xf32>
    %213 = arith.mulf %210, %212 : vector<16x64xf32>
    %214 = arith.addf %209, %213 : vector<16x64xf32>
    %215 = vector.extract_strided_slice %188 {offsets = [5, 0], sizes = [16, 64], strides = [1, 1]} : vector<22x64xf32> to vector<16x64xf32>
    %216 = vector.extract_strided_slice %185 {offsets = [5, 0], sizes = [1, 64], strides = [1, 1]} : vector<7x64xf32> to vector<1x64xf32>
    %217 = vector.broadcast %216 : vector<1x64xf32> to vector<16x64xf32>
    %218 = arith.mulf %215, %217 : vector<16x64xf32>
    %219 = arith.addf %214, %218 : vector<16x64xf32>
    %220 = vector.extract_strided_slice %188 {offsets = [6, 0], sizes = [16, 64], strides = [1, 1]} : vector<22x64xf32> to vector<16x64xf32>
    %221 = vector.extract_strided_slice %185 {offsets = [6, 0], sizes = [1, 64], strides = [1, 1]} : vector<7x64xf32> to vector<1x64xf32>
    %222 = vector.broadcast %221 : vector<1x64xf32> to vector<16x64xf32>
    %223 = arith.mulf %220, %222 : vector<16x64xf32>
    %224 = arith.addf %219, %223 : vector<16x64xf32>
    %c10 = arith.constant 10 : index
    %c0_52 = arith.constant 0 : index
    %225 = vector.load %arg5[%c10, %c0_52] : memref<24x256xf32, #tpu.memory_space<vmem>>, vector<1x64xf32>
    %226 = vector.broadcast %225 : vector<1x64xf32> to vector<16x64xf32>
    %227 = arith.addf %224, %226 : vector<16x64xf32>
    %cst_53 = arith.constant 5.000000e-01 : f32
    %228 = vector.broadcast %cst_53 : f32 to vector<16x64xf32>
    %229 = arith.mulf %228, %227 : vector<16x64xf32>
    %230 = math.tanh %229 : vector<16x64xf32>
    %cst_54 = arith.constant 5.000000e-01 : f32
    %231 = vector.broadcast %cst_54 : f32 to vector<16x64xf32>
    %232 = arith.mulf %231, %230 : vector<16x64xf32>
    %cst_55 = arith.constant 5.000000e-01 : f32
    %233 = vector.broadcast %cst_55 : f32 to vector<16x64xf32>
    %234 = arith.addf %232, %233 : vector<16x64xf32>
    %235 = arith.mulf %227, %234 : vector<16x64xf32>
    %236 = arith.truncf %235 : vector<16x64xf32> to vector<16x64xbf16>
    %c0_56 = arith.constant 0 : index
    %c1280 = arith.constant 1280 : index
    %237 = vector.load %arg3[%c0_56, %c1280] : memref<64x1408xbf16, #tpu.memory_space<vmem>>, vector<64x128xbf16>
    %cst_57 = arith.constant dense<0.000000e+00> : vector<16x128xf32>
    %238 = tpu.matmul %236, %237, %cst_57 {dimension_numbers = #tpu.dot_dimension_numbers<[1], [0], [0], [1], [0, 0, 1, 1], [], []>} : vector<16x64xbf16>, vector<64x128xbf16>, vector<16x128xf32> -> vector<16x128xf32>
    %239 = vector.extract_strided_slice %238 {offsets = [0, 0], sizes = [16, 64], strides = [1, 1]} : vector<16x128xf32> to vector<16x64xf32>
    %240 = arith.addf %150, %239 : vector<16x64xf32>
    %c9 = arith.constant 9 : index
    %c0_58 = arith.constant 0 : index
    %241 = vector.load %arg5[%c9, %c0_58] : memref<24x256xf32, #tpu.memory_space<vmem>>, vector<1x64xf32>
    %242 = vector.broadcast %241 : vector<1x64xf32> to vector<16x64xf32>
    %243 = arith.addf %240, %242 : vector<16x64xf32>
    %cst_59 = arith.constant dense<0.000000e+00> : vector<16xf32>
    %244 = vector.multi_reduction <add>, %243, %cst_59 [1] : vector<16x64xf32> to vector<16xf32>
    %245 = vector.shape_cast %244 : vector<16xf32> to vector<16x1xf32>
    %cst_60 = arith.constant 6.400000e+01 : f32
    %246 = vector.broadcast %cst_60 : f32 to vector<16x1xf32>
    %247 = arith.divf %245, %246 : vector<16x1xf32>
    %248 = vector.broadcast %247 : vector<16x1xf32> to vector<16x64xf32>
    %249 = arith.subf %243, %248 : vector<16x64xf32>
    %250 = arith.mulf %249, %249 : vector<16x64xf32>
    %cst_61 = arith.constant dense<0.000000e+00> : vector<16xf32>
    %251 = vector.multi_reduction <add>, %250, %cst_61 [1] : vector<16x64xf32> to vector<16xf32>
    %252 = vector.shape_cast %251 : vector<16xf32> to vector<16x1xf32>
    %cst_62 = arith.constant 6.400000e+01 : f32
    %253 = vector.broadcast %cst_62 : f32 to vector<16x1xf32>
    %254 = arith.divf %252, %253 : vector<16x1xf32>
    %255 = vector.broadcast %247 : vector<16x1xf32> to vector<16x64xf32>
    %256 = arith.subf %243, %255 : vector<16x64xf32>
    %cst_63 = arith.constant 9.99999996E-13 : f32
    %257 = vector.broadcast %cst_63 : f32 to vector<16x1xf32>
    %258 = arith.addf %254, %257 : vector<16x1xf32>
    %259 = math.rsqrt %258 : vector<16x1xf32>
    %260 = vector.broadcast %259 : vector<16x1xf32> to vector<16x64xf32>
    %261 = arith.mulf %256, %260 : vector<16x64xf32>
    %262 = arith.truncf %261 : vector<16x64xf32> to vector<16x64xbf16>
    %c0_64 = arith.constant 0 : index
    %c256 = arith.constant 256 : index
    %263 = vector.load %arg3[%c0_64, %c256] : memref<64x1408xbf16, #tpu.memory_space<vmem>>, vector<64x256xbf16>
    %cst_65 = arith.constant dense<0.000000e+00> : vector<16x256xf32>
    %264 = tpu.matmul %262, %263, %cst_65 {dimension_numbers = #tpu.dot_dimension_numbers<[1], [0], [0], [1], [0, 0, 1, 1], [], []>} : vector<16x64xbf16>, vector<64x256xbf16>, vector<16x256xf32> -> vector<16x256xf32>
    %c1 = arith.constant 1 : index
    %c0_66 = arith.constant 0 : index
    %265 = vector.load %arg5[%c1, %c0_66] : memref<24x256xf32, #tpu.memory_space<vmem>>, vector<1x256xf32>
    %266 = vector.broadcast %265 : vector<1x256xf32> to vector<16x256xf32>
    %267 = arith.addf %264, %266 : vector<16x256xf32>
    %cst_67 = arith.constant 5.000000e-01 : f32
    %268 = vector.broadcast %cst_67 : f32 to vector<16x256xf32>
    %269 = arith.mulf %268, %267 : vector<16x256xf32>
    %270 = math.tanh %269 : vector<16x256xf32>
    %cst_68 = arith.constant 5.000000e-01 : f32
    %271 = vector.broadcast %cst_68 : f32 to vector<16x256xf32>
    %272 = arith.mulf %271, %270 : vector<16x256xf32>
    %cst_69 = arith.constant 5.000000e-01 : f32
    %273 = vector.broadcast %cst_69 : f32 to vector<16x256xf32>
    %274 = arith.addf %272, %273 : vector<16x256xf32>
    %275 = arith.mulf %267, %274 : vector<16x256xf32>
    %276 = arith.truncf %275 : vector<16x256xf32> to vector<16x256xbf16>
    %c0_70 = arith.constant 0 : index
    %c128 = arith.constant 128 : index
    %277 = vector.load %arg4[%c0_70, %c128] : memref<256x256xbf16, #tpu.memory_space<vmem>>, vector<256x128xbf16>
    %cst_71 = arith.constant dense<0.000000e+00> : vector<16x128xf32>
    %278 = tpu.matmul %276, %277, %cst_71 {dimension_numbers = #tpu.dot_dimension_numbers<[1], [0], [0], [1], [0, 0, 1, 1], [], []>} : vector<16x256xbf16>, vector<256x128xbf16>, vector<16x128xf32> -> vector<16x128xf32>
    %279 = vector.extract_strided_slice %278 {offsets = [0, 0], sizes = [16, 64], strides = [1, 1]} : vector<16x128xf32> to vector<16x64xf32>
    %280 = arith.addf %243, %279 : vector<16x64xf32>
    %c8 = arith.constant 8 : index
    %c0_72 = arith.constant 0 : index
    %281 = vector.load %arg5[%c8, %c0_72] : memref<24x256xf32, #tpu.memory_space<vmem>>, vector<1x64xf32>
    %282 = vector.broadcast %281 : vector<1x64xf32> to vector<16x64xf32>
    %283 = arith.addf %280, %282 : vector<16x64xf32>
    %cst_73 = arith.constant dense<0.000000e+00> : vector<16xf32>
    %284 = vector.multi_reduction <add>, %283, %cst_73 [1] : vector<16x64xf32> to vector<16xf32>
    %285 = vector.shape_cast %284 : vector<16xf32> to vector<16x1xf32>
    %cst_74 = arith.constant 6.400000e+01 : f32
    %286 = vector.broadcast %cst_74 : f32 to vector<16x1xf32>
    %287 = arith.divf %285, %286 : vector<16x1xf32>
    %288 = vector.broadcast %287 : vector<16x1xf32> to vector<16x64xf32>
    %289 = arith.subf %283, %288 : vector<16x64xf32>
    %290 = arith.mulf %289, %289 : vector<16x64xf32>
    %cst_75 = arith.constant dense<0.000000e+00> : vector<16xf32>
    %291 = vector.multi_reduction <add>, %290, %cst_75 [1] : vector<16x64xf32> to vector<16xf32>
    %292 = vector.shape_cast %291 : vector<16xf32> to vector<16x1xf32>
    %cst_76 = arith.constant 6.400000e+01 : f32
    %293 = vector.broadcast %cst_76 : f32 to vector<16x1xf32>
    %294 = arith.divf %292, %293 : vector<16x1xf32>
    %295 = vector.broadcast %287 : vector<16x1xf32> to vector<16x64xf32>
    %296 = arith.subf %283, %295 : vector<16x64xf32>
    %cst_77 = arith.constant 9.99999996E-13 : f32
    %297 = vector.broadcast %cst_77 : f32 to vector<16x1xf32>
    %298 = arith.addf %294, %297 : vector<16x1xf32>
    %299 = math.rsqrt %298 : vector<16x1xf32>
    %300 = vector.broadcast %299 : vector<16x1xf32> to vector<16x64xf32>
    %301 = arith.mulf %296, %300 : vector<16x64xf32>
    %c11 = arith.constant 11 : index
    %c0_78 = arith.constant 0 : index
    %302 = vector.load %arg5[%c11, %c0_78] : memref<24x256xf32, #tpu.memory_space<vmem>>, vector<1x64xf32>
    %303 = vector.broadcast %302 : vector<1x64xf32> to vector<16x64xf32>
    %304 = arith.mulf %301, %303 : vector<16x64xf32>
    %c12 = arith.constant 12 : index
    %c0_79 = arith.constant 0 : index
    %305 = vector.load %arg5[%c12, %c0_79] : memref<24x256xf32, #tpu.memory_space<vmem>>, vector<1x64xf32>
    %306 = vector.broadcast %305 : vector<1x64xf32> to vector<16x64xf32>
    %307 = arith.addf %304, %306 : vector<16x64xf32>
    %c0_80 = arith.constant 0 : index
    %c0_81 = arith.constant 0 : index
    %308 = vector.load %arg6[%c0_80, %c0_81] : memref<16x64xf32, #tpu.memory_space<vmem>>, vector<16x64xf32>
    tpu.vector_store %arg6[%c0_80, %c0_81], %307 {strides = array<i32>} : memref<16x64xf32, #tpu.memory_space<vmem>>, vector<16x64xf32>,
    return
  }
  func.func @transform_0(%arg0: i32, %arg1: memref<2xi32, #tpu.memory_space<smem>>) -> (i32, i32) {
    %c0_i32 = arith.constant 0 : i32
    %c0_i32_0 = arith.constant 0 : i32
    return %arg0, %c0_i32 : i32, i32
  }
  func.func @transform_1(%arg0: i32, %arg1: memref<2xi32, #tpu.memory_space<smem>>) -> (i32, i32) {
    %c0_i32 = arith.constant 0 : i32
    %c0_i32_0 = arith.constant 0 : i32
    %c0_i32_1 = arith.constant 0 : i32
    return %c0_i32, %c0_i32_0 : i32, i32
  }
  func.func @transform_2(%arg0: i32, %arg1: memref<2xi32, #tpu.memory_space<smem>>) -> (i32, i32) {
    %c0_i32 = arith.constant 0 : i32
    %c0_i32_0 = arith.constant 0 : i32
    %c0_i32_1 = arith.constant 0 : i32
    return %c0_i32, %c0_i32_0 : i32, i32
  }
  func.func @transform_3(%arg0: i32, %arg1: memref<2xi32, #tpu.memory_space<smem>>) -> (i32, i32) {
    %c0_i32 = arith.constant 0 : i32
    %c0_i32_0 = arith.constant 0 : i32
    %c0_i32_1 = arith.constant 0 : i32
    return %c0_i32, %c0_i32_0 : i32, i32
  }
  func.func @transform_4(%arg0: i32, %arg1: memref<2xi32, #tpu.memory_space<smem>>) -> (i32, i32) {
    %c0_i32 = arith.constant 0 : i32
    %c0_i32_0 = arith.constant 0 : i32
    return %arg0, %c0_i32 : i32, i32
  }
}

</mosaic_0001>

<bundles_post_ra>
// kernel: tpu_custom_call.1
= control target key start
LH: loop header
LB: loop body
LE: loop exit
PB: predicated region body
PF: predicated region fallthrough
CT: control target
= control target key end

     0   :  { %s3121_s18 = smov [#allocation3]   ;;  %s3631_s0 = inlined_call_operand.hbm [shape: s32[2], index: 0, kind: input, shape index: {}]   ;;  %s3632_s1 = inlined_call_operand.hbm [shape: f32[32,64], index: 1, kind: input, shape index: {}]   ;;  %s3633_s2 = inlined_call_operand.hbm [shape: bf16[64,1408], index: 2, kind: input, shape index: {}]   ;;  %s3634_s3 = inlined_call_operand.hbm [shape: bf16[256,256], index: 3, kind: input, shape index: {}]   ;;  %s3635_s4 = inlined_call_operand.hbm [shape: f32[24,256], index: 4, kind: input, shape index: {}]   ;;  %s3636_s5 = inlined_call_operand.hbm [shape: f32[32,64], index: 5, kind: output, shape index: {}]  }
   0x1   :  { %11 = dma.hbm_to_smem %s3631_s0, 16, %s3121_s18, [#allocation2] }
   0x2   :  { %3087 = dma.done.wait [#allocation2], 16 }
   0x3   :  { %3088 = vsyncadd [#allocation2], 4294967280 }
   0x4   :  { %13 = sfence }
   0x5   :  { %14 = vsyncpa [#allocation5], 0 }
   0x6   :  { %16 = vsyncpa [#allocation5 + $0x1], 0 }
   0x7   :  { %17 = vsyncpa [#allocation8], 0 }
   0x8   :  { %18 = vsyncpa [#allocation11], 0 }
   0x9   :  { %19 = vsyncpa [#allocation6], 0 }
   0xa   :  { %21 = vsyncpa [#allocation6 + $0x1], 0  ;;  %s3177_s21 = smov 0   ;;  %s3179_s22 = smov 0  }
   0xb   :  { %s3181_s23 = smov 0   ;;  %s3183_s24 = smov 0  }
   0xc LB: > { %s3198_s0 = sadd.s32 4294967295, %s3119_s24   ;;  %s2336_s25 = sadd.s32 4294967294, %s3119_s24   ;;  %s3119_s24 = sphi %s3183_s24, %s3662_s24   ;;  %s3115_s23 = sphi %s3181_s23, %s3661_s23   ;;  %s3111_s22 = sphi %s3179_s22, %s3660_s22   ;;  %s3107_s21 = sphi %s3177_s21, %s3659_s21  }
   0xd   : > { %p47_p0 = scmp.ne.s32.totalorder %s3111_s22, %s3107_s21  ;;  %p3637_p1 = scmp.eq.s32.totalorder %s3198_s0, 0 }
   0xe   : > { %p140_p3 = scmp.eq.s32.totalorder %s2336_s25, 1  ;;  %p2337_p5 = scmp.ge.s32.totalorder %s3119_s24, 1 }
   0xf   : > { %p3207_p4 = por %p3637_p1, %p47_p0  ;;  %p147_p7 = scmp.lt.s32.totalorder %s3119_s24, 3 }
  0x10   : > { %p3212_p6 = por %p140_p3, %p47_p0  ;;  %s3122_s29 = smov [#allocation7]  }
  0x11   : > { %s3641_s26 = scalar_select %p3207_p4, 1, 0 }
  0x12   : > { %s3642_s27 = scalar_select %p3212_p6, 1, 0 }
  0x13   : > { %p3217_p8 = pnand %p2337_p5, %p147_p7  ;;  %s159_s30 = sshll.u32 %s3122_s29, 4  ;;  %s160_s30 = int_to_ptr.vmem [resolvable:$true] %s159_s30 }
  0x14   : > { %s3123_s7 = smov [#allocation9]   ;;  %s2950_s9 = scalar_lea.vmem %s160_s30, 5632 }
  0x15   : > { %s3643_s28 = scalar_select %p3217_p8, 1, 0 }
  0x16   : > { %p2624_p9 = pneg %p3217_p8  ;;  %s172_s8 = sshll.u32 %s3123_s7, 4  ;;  %s173_s8 = int_to_ptr.vmem [resolvable:$true] %s172_s8 }
  0x17   : > { %p2951_p13 = scmp.ne.s32.totalorder %s160_s30, %s2950_s9  ;;  %p2958_p5 = scmp.lt.s32.totalorder %s160_s30, %s160_s30 }
  0x18   : > { %p3226_p11 = pnand %p2624_p9, %p3637_p1  ;;  %p2959_p7 = scmp.lt.s32.totalorder %s2950_s9, %s2950_s9 }
  0x1a   : > { %p2941_p12 = pneg %p3226_p11  ;;  %p2960_p10 = por %p2959_p7, %p2958_p5 }
  0x1c   : > { %p2953_p0 = pnand %p2951_p13, %p2941_p12 }
  0x1e   : > { %p2954_p3 = pneg %p2953_p0 }
  0x20   : > { %p2961_p9 = pnand %p2960_p10, %p2954_p3 }
  0x22   : > { %2964 = shalt.err (!%p2961_p9)
}
  0x23   : > { %s3124_s10 = smov 704   ;;  %s3125_s11 = smov 44  }
  0x24   : > { %2627 = dma.hbm_to_vmem [thread:$0]  (!%p3226_p11), %s3633_s2, 5632, %s160_s30, [#allocation8], %s3124_s10, %s3124_s10, %s3125_s11  }
  0x25   : > { %s2976_s14 = scalar_lea.vmem %s173_s8, 4096  ;;  %p2984_p2 = scmp.lt.s32.totalorder %s173_s8, %s173_s8 }
  0x26   : > { %p2977_p1 = scmp.ne.s32.totalorder %s173_s8, %s2976_s14  ;;  %p2985_p6 = scmp.lt.s32.totalorder %s2976_s14, %s2976_s14 }
  0x28   : > { %p2979_p13 = pnand %p2977_p1, %p2941_p12  ;;  %p2986_p5 = por %p2985_p6, %p2984_p2 }
  0x2a   : > { %p2980_p0 = pneg %p2979_p13 }
  0x2c   : > { %p2987_p10 = pnand %p2986_p5, %p2980_p0 }
  0x2e   : > { %2990 = shalt.err (!%p2987_p10)
}
  0x2f   : > { %s3126_s15 = smov 128   ;;  %s3127_s16 = smov 8  }
  0x30   : > { %2630 = dma.hbm_to_vmem [thread:$0]  (!%p3226_p11), %s3634_s3, 4096, %s173_s8, [#allocation8], %s3126_s15, %s3126_s15, %s3127_s16  }
  0x31   : > { %s3128_s19 = smov [#allocation10]  }
  0x32   : > { %s185_s20 = sshll.u32 %s3128_s19, 4  ;;  %s186_s20 = int_to_ptr.vmem [resolvable:$true] %s185_s20 }
  0x33   : > { %s3002_s25 = scalar_lea.vmem %s186_s20, 768  ;;  %p3010_p3 = scmp.lt.s32.totalorder %s186_s20, %s186_s20 }
  0x34   : > { %p3003_p1 = scmp.ne.s32.totalorder %s186_s20, %s3002_s25  ;;  %p3011_p7 = scmp.lt.s32.totalorder %s3002_s25, %s3002_s25 }
  0x36   : > { %p3005_p2 = pnand %p3003_p1, %p2941_p12  ;;  %p3012_p9 = por %p3011_p7, %p3010_p3 }
  0x38   : > { %p3006_p6 = pneg %p3005_p2 }
  0x3a   : > { %p3013_p13 = pnand %p3012_p9, %p3006_p6 }
  0x3c   : > { %3016 = shalt.err (!%p3013_p13)
}
  0x3d   : > { %s3129_s29 = smov 256   ;;  %s3130_s30 = smov 16  }
  0x3e   : > { %2633 = dma.hbm_to_vmem [thread:$0]  (!%p3226_p11), %s3635_s4, 768, %s186_s20, [#allocation11], %s3129_s29, %s3129_s29, %s3130_s30  }
  0x3f   : > { %s3260_s9 = sadd.s32 1, %s3119_s24   ;;  %s34_s11 = sadd.s32 1, %s3115_s23 }
  0x40   : > { %s31_s10 = ssub.s32 %s3119_s24, %s3260_s9  ;;  %p41_p0 = scmp.ne.s32.totalorder %s3115_s23, %s3111_s22 }
  0x41   : > { %p32_p12 = scmp.eq.s32.totalorder %s31_s10, 0  ;;  %p42_p5 = scmp.eq.s32.totalorder %s3119_s24, 0 }
  0x42   : > { %p2645_p10 = scmp.lt.s32.totalorder %s3119_s24, 2  ;;  %p3645_p2 = scmp.eq.s32.totalorder %s3198_s0, 1 }
  0x43   : > { %s3270_s12 = scalar_select %p32_p12, %s3115_s23, %s34_s11  }
  0x44   : > { %p43_p1 = por %p42_p5, %p41_p0  ;;  %p3274_p6 = por %p3645_p2, %p41_p0 }
  0x45   : > { %s199_s6 = sand.u32 1, %s3115_s23   ;;  %s2447_s14 = sshll.u32 %s3119_s24, 8 }
  0x46   : > { %s3646_s13 = scalar_select %p3274_p6, 1, 0 }
  0x47   : > { %s2342_s17 = sshll.u32 %s199_s6, 4  ;;  %s3283_s20 = scalar_lea.hbm %s3632_s1, %s2447_s14 }
  0x48   : > { %s203_s25 = scalar_lea.vmem [#allocation4], %s2342_s17  ;;  %p3285_p11 = pnand %p2645_p10, %p43_p1 }
  0x49   : > { %s210_s29 = sshll.u32 %s203_s25, 4  ;;  %s3291_s7 = scalar_lea.sflag [#allocation5], %s199_s6  ;;  %s3289_s29 = int_to_ptr.vmem [resolvable:$true] %s210_s29 }
  0x4a   : > { %s3017_s8 = scalar_lea.hbm %s3283_s20, 256  ;;  %p3019_p7 = pneg %p3285_p11 }
  0x4b   : > { %p3018_p3 = scmp.ne.s32.totalorder %s3283_s20, %s3017_s8  ;;  %s3022_s14 = scalar_lea.hbm %s3632_s1, 512 }
  0x4c   : > { %p3023_p12 = scmp.lt.s32.totalorder %s3283_s20, %s3632_s1  ;;  %p3024_p0 = scmp.lt.s32.totalorder %s3022_s14, %s3017_s8 }
  0x4d   : > { %p3020_p9 = pnand %p3019_p7, %p3018_p3 }
  0x4e   : > { %p3025_p5 = por %p3024_p0, %p3023_p12 }
  0x4f   : > { %p3021_p13 = pneg %p3020_p9 }
  0x51   : > { %p3026_p10 = pnand %p3025_p5, %p3021_p13 }
  0x53   : > { %3029 = shalt.err (!%p3026_p10)
}
  0x54   : > { %s3030_s6 = scalar_lea.vmem %s3289_s29, 256  ;;  %s3131_s19 = smov [#allocation4]  }
  0x55   : > { %p3031_p1 = scmp.ne.s32.totalorder %s3289_s29, %s3030_s6  ;;  %s3035_s25 = sshll.u32 %s3131_s19, 4  ;;  %s3036_s25 = int_to_ptr.vmem [resolvable:$false] %s3035_s25 }
  0x56   : > { %s3037_s10 = scalar_lea.vmem %s3036_s25, 512  ;;  %p3038_p9 = scmp.lt.s32.totalorder %s3289_s29, %s3036_s25 }
  0x57   : > { %p3033_p2 = pnand %p3031_p1, %p3019_p7  ;;  %p3039_p6 = scmp.lt.s32.totalorder %s3037_s10, %s3030_s6 }
  0x59   : > { %p3034_p3 = pneg %p3033_p2  ;;  %p3040_p4 = por %p3039_p6, %p3038_p9 }
  0x5b   : > { %p3041_p8 = pnand %p3040_p4, %p3034_p3 }
  0x5d   : > { %3044 = shalt.err (!%p3041_p8)
}
  0x5e   : > { %2637 = dma.hbm_to_vmem [thread:$0]  (!%p3285_p11), %s3283_s20, 256, %s3289_s29, %s3291_s7, %s3126_s15, %s3126_s15, %s3127_s16  }
  0x5f   : > { %p3648_p7 = scmp.ne.s32.totalorder %s3643_s28, 0 }
  0x60   : > { %s3318_s8 = sand.u32 (!%p3648_p7), 1, %s3111_s22   ;;  %p3649_p4 = scmp.ne.s32.totalorder (!%p3648_p7), %s3641_s26, 0 }
  0x61   : > { %222 = sbr.rel (%p3648_p7) target bundleno = 4416 (0x1140), region = 36  ;;  %s2346_s11 = sshll.u32 (!%p3648_p7), %s3318_s8, 4 }
  0x62   : > { %s225_s14 = scalar_lea.sflag (!%p3648_p7), [#allocation5], %s3318_s8  ;;  %s228_s30 = scalar_lea.vmem (!%p3648_p7), [#allocation4], %s2346_s11 }
  0x66   : > { %3090 = dma.done.wait (%p3649_p4), %s225_s14, 256  }
  0x67   : > { %3092 = vsyncadd (%p3649_p4), %s225_s14, 4294967040  ;;  %p3650_p8 = scmp.eq.s32.totalorder %s3198_s0, 0 }
  0x69   : > { %3094 = dma.done.wait (%p3650_p8), [#allocation8], 9728   ;;  %p3651_p6 = pmov %p3650_p8 }
  0x6b   : > { %3096 = vsyncadd (%p3651_p6), [#allocation8], 4294957568  ;;  %p3652_p11 = pmov %p3651_p6 }
  0x6c   : > { %p3653_p13 = pmov %p3651_p6 }
  0x6d   : > { %3098 = dma.done.wait (%p3652_p11), [#allocation11], 768  }
  0x6e   : > { %3100 = vsyncadd (%p3653_p13), [#allocation11], 4294966528  ;;  %vm271_vm0 = vcmask 523264   ;;  %v3336_v0 = vld [vmem:[%s228_s30] sm:$0xff]  ;;  %v3338_v1 = vld [vmem:[%s228_s30 + $0x8] sm:$0xff]  ;;  %v3132_v18 = vmov 0   ;;  %v310_v50 = vlaneseq }
  0x6f   : > { %v272_v2 = vsel %vm271_vm0, %v3336_v0, 0.0  ;;  %v275_v3 = vsel %vm271_vm0, %v3338_v1, 0.0  ;;  %v2763_v14 = vld [vmem:[#allocation7 + $0x10c] ss:$44 sps:$4 sm:$0xff]   ;;  %v2765_v15 = vld [vmem:[#allocation7 + $0x108] ss:$44 sps:$4 sm:$0xff]   ;;  %395 = vmatprep.mubr.bf16.mxu1 %v3132_v18  ;;  %744 = vmatprep.mubr.bf16.mxu0 %v3132_v18 }
  0x70   : > { %273 = vadd.xlane.f32.xlu0 %v272_v2  ;;  %v2766_v16 = vld [vmem:[#allocation7 + $0xb4] ss:$44 sps:$4 sm:$0xff]   ;;  %371 = vmatprep.subr.bf16.mxu1 %v2763_v14  ;;  %v2768_v17 = vld [vmem:[#allocation7 + $0xb0] ss:$44 sps:$4 sm:$0xff]   ;;  %v2771_v20 = vld [vmem:[#allocation7 + $0x58] ss:$44 sps:$4 sm:$0xff]  }
  0x71   : > { %372 = vmatpush1.bf16.msra.mxu1 %v2765_v15  ;;  %v2769_v19 = vld [vmem:[#allocation7 + $0x5c] ss:$44 sps:$4 sm:$0xff]   ;;  %v2772_v21 = vld [vmem:[#allocation7 + $0x4] ss:$44 sps:$4 sm:$0xff]   ;;  %v2774_v22 = vld [vmem:[#allocation7] ss:$44 sps:$4 sm:$0xff]  }
  0x72   : > { %373 = vmatprep.subr.bf16.mxu1 %v2766_v16  ;;  %v2775_v34 = vld [vmem:[#allocation9 + $0xf0] ss:$8 sps:$4 sm:$0xff]   ;;  %v2777_v36 = vld [vmem:[#allocation9 + $0xe0] ss:$8 sps:$4 sm:$0xff]   ;;  %v3352_v51 = vshrl.u32 %v310_v50, 7  ;;  %vm3134_vm1 = vmmov 0  }
  0x73   : > { %v2776_v35 = vld [vmem:[#allocation9 + $0x70] ss:$8 sps:$4 sm:$0xff]   ;;  %v2778_v37 = vld [vmem:[#allocation9 + $0x60] ss:$8 sps:$4 sm:$0xff]   ;;  %vm877_vm2 = vcmask 130048   ;;  %s3135_s26 = smov 112  }
  0x74   : > { %276 = vadd.xlane.f32.xlu0 %v275_v3  ;;  %v2779_v38 = vld [vmem:[#allocation9 + $0xd0] ss:$8 sps:$4 sm:$0xff]   ;;  %v2781_v40 = vld [vmem:[#allocation9 + $0xc0] ss:$8 sps:$4 sm:$0xff]   ;;  %v3355_v52 = vsub.s32 0, %v3352_v51  ;;  %v3358_v54 = vsub.s32 1, %v3352_v51 }
  0x75   : > { %374 = vmatpush1.bf16.msra.mxu1 %v2768_v17  ;;  %v2780_v39 = vld [vmem:[#allocation9 + $0x50] ss:$8 sps:$4 sm:$0xff]   ;;  %v2782_v41 = vld [vmem:[#allocation9 + $0x40] ss:$8 sps:$4 sm:$0xff]   ;;  %s3136_s28 = smov 96   ;;  %s3137_s15 = smov 80  }
  0x76   : > { %375 = vmatprep.subr.bf16.mxu1 %v2769_v19  ;;  %v2783_v42 = vld [vmem:[#allocation9 + $0xb0] ss:$8 sps:$4 sm:$0xff]   ;;  %v2785_v44 = vld [vmem:[#allocation9 + $0xa0] ss:$8 sps:$4 sm:$0xff]   ;;  %s270_s16 = sld [smem:[#allocation3 + %s3198_s0]]  ;;  %s3138_s20 = smov 16  }
  0x77   : > { %v2784_v43 = vld [vmem:[#allocation9 + $0x30] ss:$8 sps:$4 sm:$0xff]   ;;  %v2786_v45 = vld [vmem:[#allocation9 + $0x20] ss:$8 sps:$4 sm:$0xff]   ;;  %s3139_s29 = smov 32   ;;  %s3140_s7 = smov 48  }
  0x78   : > { %v2787_v46 = vld [vmem:[#allocation9 + $0x90] ss:$8 sps:$4 sm:$0xff]   ;;  %v2789_v48 = vld [vmem:[#allocation9 + $0x80] ss:$8 sps:$4 sm:$0xff]   ;;  %vm1390_vm4 = vcmask 261120   ;;  %vm1393_vm5 = vcmask 392192  }
  0x79   : > { %376 = vmatpush1.bf16.msra.mxu1 %v2771_v20  ;;  %v2788_v47 = vld [vmem:[#allocation9 + $0x10] ss:$8 sps:$4 sm:$0xff]   ;;  %v2790_v49 = vld [vmem:[#allocation9] ss:$8 sps:$4 sm:$0xff]   ;;  %vm1625_vm6 = vcmask 1042432   ;;  %vm1652_vm7 = vcmask 1046528  }
  0x7a   : > { %377 = vmatprep.subr.bf16.mxu1 %v2772_v21  ;;  %v308_v53 = vld [vmem:[#allocation10] ss:$8 sm:$0x3]  ;;  %vm1672_vm8 = vcmask 1045504   ;;  %vm1692_vm9 = vcmask 1044480   ;;  %vm1712_vm10 = vcmask 1043456  }
  0x7b   : > { %v313_v55 = vrot.slane %v308_v53, %v3355_v52  ;;  %v317_v56 = vrot.slane %v308_v53, %v3358_v54  ;;  %v2796_v53 = vld [vmem:[#allocation7 + $0xc8] ss:$44 sps:$4 sm:$0xff]   ;;  %vm1751_vm11 = vcmask 1041408   ;;  %s2448_s17 = sshll.u32 %s3198_s0, 8  ;;  %s264_s18 = scalar_lea.vmem [#allocation12], %s2346_s11 }
  0x7c   : > { %s2234_s6 = sshll.u32 %s264_s18, 4  ;;  %s3585_s10 = scalar_lea.hbm %s3636_s5, %s2448_s17  ;;  %s3587_s6 = int_to_ptr.vmem [resolvable:$true] %s2234_s6 }
  0x7d   : > { %378 = vmatpush1.bf16.msra.mxu1 %v2774_v22  ;;  %s2221_s0 = scalar_lea.sflag [#allocation6], %s3318_s8  ;;  %s3045_s14 = scalar_lea.vmem %s3587_s6, 256 }
  0x7e   : > { %2449 = vmatprep.subr.bf16.mxu1 %v2775_v34  ;;  %p3046_p12 = scmp.ne.s32.totalorder %s3587_s6, %s3045_s14  ;;  %p3656_p0 = scmp.ne.s32.totalorder %s3646_s13, 0 }
  0x7f   : > { %s3141_s11 = smov [#allocation12]  }
  0x80   : > { %p3047_p5 = pnand %p3046_p12, %p3656_p0  ;;  %s3049_s30 = sshll.u32 %s3141_s11, 4  ;;  %s3050_s30 = int_to_ptr.vmem [resolvable:$false] %s3049_s30 }
  0x81   : > { %p3052_p1 = scmp.lt.s32.totalorder %s3587_s6, %s3050_s30 }
  0x82   : > { %p3048_p10 = pneg %p3047_p5 }
  0xf9   : > { %v274_v4 = vpop.xlane.xlu0 %273 }
  0xfa   : > { %v279_v5 = vmul.f32 0.015625, %v274_v4 }
  0xfc   : > { %v281_v6 = vsub.f32 %v3336_v0, %v279_v5 }
  0xfd   : > { %v277_v7 = vpop.xlane.xlu0 %276 }
  0xfe   : > { %v280_v8 = vmul.f32 0.015625, %v277_v7  ;;  %v283_v9 = vmul.f32 %v281_v6, %v281_v6 }
 0x100   : > { %v282_v10 = vsub.f32 %v3338_v1, %v280_v8  ;;  %v285_v11 = vsel %vm271_vm0, %v283_v9, 0.0 }
 0x101   : > { %286 = vadd.xlane.f32.xlu1 %v285_v11 }
 0x102   : > { %v284_v12 = vmul.f32 %v282_v10, %v282_v10 }
 0x104   : > { %v288_v13 = vsel %vm271_vm0, %v284_v12, 0.0 }
 0x105   : > { %289 = vadd.xlane.f32.xlu1 %v288_v13 }
 0x18a   : > { %v287_v23 = vpop.xlane.xlu1 %286 }
 0x18b   : > { %v291_v24 = vmul.f32 0.015625, %v287_v23 }
 0x18d   : > { %v293_v25 = vadd.f32 1e-12, %v291_v24 }
 0x18e   : > { %v290_v26 = vpop.xlane.xlu1 %289 }
 0x18f   : > { %v292_v27 = vmul.f32 0.015625, %v290_v26  ;;  %2855 = vrsqrt.f32 %v293_v25 }
 0x191   : > { %v294_v28 = vadd.f32 1e-12, %v292_v27 }
 0x193   : > { %2857 = vrsqrt.f32 %v294_v28 }
 0x19c   : > { %v2856_v29 = vpop.eup %2855 }
 0x19d   : > { %v297_v31 = vmul.f32 %v2856_v29, %v281_v6  ;;  %v599_v29 = vld [vmem:[#allocation10 + $0x7] ss:$0 sm:$0xff] }
 0x1a0   : > { %v2858_v30 = vpop.eup %2857 }
 0x1a1   : > { %v298_v32 = vmul.f32 %v2858_v30, %v282_v10 }
 0x1a3   : > { %v299_v33 = vpack.c.bf16 %v298_v32, %v297_v31 }
 0x1a5   : > { %2359 = vmatmul.mubr.msk.bf16.vlgmr.msra.gmra.mxu1 %vm271_vm0, %v299_v33 }
 0x1a6   : > { %2450 = vmatpush3.bf16.msra.mxu1 %v2776_v35 }
 0x1a7   : > { %2451 = vmatprep.subr.bf16.mxu1 %v2777_v36 }
 0x1aa   : > { %2452 = vmatpush3.bf16.msra.mxu1 %v2778_v37 }
 0x1ab   : > { %2453 = vmatprep.subr.bf16.mxu1 %v2779_v38 }
 0x1ae   : > { %2454 = vmatpush3.bf16.msra.mxu1 %v2780_v39 }
 0x1af   : > { %2455 = vmatprep.subr.bf16.mxu1 %v2781_v40 }
 0x1b2   : > { %2456 = vmatpush3.bf16.msra.mxu1 %v2782_v41 }
 0x1b3   : > { %2457 = vmatprep.subr.bf16.mxu1 %v2783_v42 }
 0x1b6   : > { %2458 = vmatpush3.bf16.msra.mxu1 %v2784_v43 }
 0x1b7   : > { %2459 = vmatprep.subr.bf16.mxu1 %v2785_v44 }
 0x1ba   : > { %2460 = vmatpush3.bf16.msra.mxu1 %v2786_v45 }
 0x1bb   : > { %2461 = vmatprep.subr.bf16.mxu1 %v2787_v46 }
 0x1be   : > { %2462 = vmatpush3.bf16.msra.mxu1 %v2788_v47  ;;  %v2791_v47 = vld [vmem:[#allocation7 + $0x124] ss:$44 sps:$4 sm:$0xff]  }
 0x1bf   : > { %2463 = vmatprep.subr.bf16.mxu1 %v2789_v48  ;;  %v2793_v48 = vld [vmem:[#allocation7 + $0x120] ss:$44 sps:$4 sm:$0xff]   ;;  %720 = vmatprep.subr.bf16.mxu0 %v2791_v47 }
 0x1c0   : > { %721 = vmatpush1.bf16.msra.mxu0 %v2793_v48 }
 0x1c2   : > { %2464 = vmatpush3.bf16.msra.mxu1 %v2790_v49  ;;  %v2794_v49 = vld [vmem:[#allocation7 + $0xcc] ss:$44 sps:$4 sm:$0xff]  }
 0x1c3   : > { %722 = vmatprep.subr.bf16.mxu0 %v2794_v49 }
 0x1c4   : > { %723 = vmatpush1.bf16.msra.mxu0 %v2796_v53 }
 0x265   : > { %v397_v57 = vpop.f32.mrf.mxu1 }
 0x266   : > { %v398_v58 = vadd.f32 %v397_v57, %v313_v55  ;;  %v2799_v57 = vld [vmem:[#allocation7 + $0x70] ss:$44 sps:$4 sm:$0xff]  }
 0x267   : > { %v399_v59 = vpop.f32.mrf.mxu1 }
 0x268   : > { %v406_v60 = vmul.f32 0.5, %v398_v58  ;;  %v400_v61 = vadd.f32 %v399_v59, %v317_v56  ;;  %v2802_v59 = vld [vmem:[#allocation7 + $0x18] ss:$44 sps:$4 sm:$0xff]  }
 0x269   : > { %v401_v62 = vpop.f32.mrf.mxu1 }
 0x26a   : > { %v407_v63 = vmul.f32 0.5, %v400_v61  ;;  %v402_v2 = vadd.f32 %v401_v62, %v313_v55  ;;  %2859 = vtanh.f32 %v406_v60  ;;  %v2797_v55 = vld [vmem:[#allocation7 + $0x74] ss:$44 sps:$4 sm:$0xff]  }
 0x26b   : > { %v403_v3 = vpop.f32.mrf.mxu1  ;;  %724 = vmatprep.subr.bf16.mxu0 %v2797_v55 }
 0x26c   : > { %2861 = vtanh.f32 %v407_v63  ;;  %v408_v4 = vmul.f32 0.5, %v402_v2  ;;  %v404_v5 = vadd.f32 %v403_v3, %v317_v56  ;;  %v3133_v56 = vmov 0.0   ;;  %725 = vmatpush1.bf16.msra.mxu0 %v2799_v57 }
 0x26d   : > { %2536 = vmatprep.subr.bf16.mxu1 %v3133_v56 }
 0x26e   : > { %2863 = vtanh.f32 %v408_v4  ;;  %v409_v6 = vmul.f32 0.5, %v404_v5 }
 0x270   : > { %2865 = vtanh.f32 %v409_v6 }
 0x277   : > { %v2860_v7 = vpop.eup %2859 }
 0x278   : > { %v414_v11 = vmul.f32 0.5, %v2860_v7 }
 0x279   : > { %v2862_v8 = vpop.eup %2861 }
 0x27a   : > { %v415_v9 = vmul.f32 0.5, %v2862_v8  ;;  %v418_v17 = vadd.f32 0.5, %v414_v11  ;;  %v2803_v8 = vld [vmem:[#allocation7 + $0x128] ss:$44 sps:$4 sm:$0xff]   ;;  %v2805_v11 = vld [vmem:[#allocation7 + $0x78] ss:$44 sps:$4 sm:$0xff]  }
 0x27b   : > { %v2864_v10 = vpop.eup %2863 }
 0x27c   : > { %v416_v12 = vmul.f32 0.5, %v2864_v10  ;;  %v419_v14 = vadd.f32 0.5, %v415_v9  ;;  %v422_v23 = vmul.f32 %v418_v17, %v398_v58  ;;  %v2800_v58 = vld [vmem:[#allocation7 + $0x1c] ss:$44 sps:$4 sm:$0xff]  }
 0x27d   : > { %v2866_v13 = vpop.eup %2865  ;;  %726 = vmatprep.subr.bf16.mxu0 %v2800_v58  ;;  %v2804_v10 = vld [vmem:[#allocation7 + $0xd0] ss:$44 sps:$4 sm:$0xff]  }
 0x27e   : > { %v420_v15 = vadd.f32 0.5, %v416_v12  ;;  %v417_v16 = vmul.f32 0.5, %v2866_v13  ;;  %v423_v21 = vmul.f32 %v419_v14, %v400_v61  ;;  %727 = vmatpush1.bf16.msra.mxu0 %v2802_v59  ;;  %v2806_v12 = vld [vmem:[#allocation7 + $0x20] ss:$44 sps:$4 sm:$0xff]  }
 0x27f   : > { %2524 = vmatprep.subr.bf16.mxu0 %v3133_v56  ;;  %v796_v14 = vld [vmem:[#allocation10 + $0x3] ss:$0 sm:$0xff] }
 0x280   : > { %v421_v19 = vadd.f32 0.5, %v417_v16  ;;  %v424_v20 = vmul.f32 %v420_v15, %v402_v2  ;;  %v799_v16 = vld [vmem:[#allocation10 + $0x4] ss:$0 sm:$0xff] }
 0x282   : > { %v425_v22 = vmul.f32 %v421_v19, %v404_v5  ;;  %v426_v25 = vpack.c.bf16 %v424_v20, %v422_v23 }
 0x284   : > { %v427_v24 = vpack.c.bf16 %v425_v22, %v423_v21 }
 0x286   : > { %588 = vmatprep.mubr.bf16.mxu1 %v427_v24 }
 0x287   : > { %589 = vmatmul.mubr.bf16.vlgmr.msra.gmra.mxu1 %v426_v25 }
 0x288   : > { %2538 = vmatprep.mubr.msk.bf16.mxu1 %vm3134_vm1, %v3133_v56 }
 0x347   : > { %v2465_v26 = vpop.f32.mrf.mxu1 }
 0x349   : > { %v2466_v27 = vpop.f32.mrf.mxu1 }
 0x34a   : > { %v2467_v28 = vadd.f32 %v2466_v27, %v2465_v26 }
 0x34b   : > { %v2468_v30 = vpop.f32.mrf.mxu1 }
 0x34c   : > { %v597_v31 = vadd.f32 %v2467_v28, %v3336_v0 }
 0x34d   : > { %v2469_v32 = vpop.f32.mrf.mxu1 }
 0x34e   : > { %v3363_v33 = vadd.f32 %v599_v29, %v597_v31  ;;  %v2470_v34 = vadd.f32 %v2469_v32, %v2468_v30  ;;  %v802_v30 = vld [vmem:[#allocation10 + $0x5] ss:$0 sm:$0xff] }
 0x350   : > { %v598_v35 = vadd.f32 %v2470_v34, %v3338_v1  ;;  %v602_v36 = vsel %vm271_vm0, %v3363_v33, 0.0 }
 0x351   : > { %603 = vadd.xlane.f32.xlu0 %v602_v36 }
 0x352   : > { %v3368_v37 = vadd.f32 %v599_v29, %v598_v35 }
 0x354   : > { %v605_v38 = vsel %vm271_vm0, %v3368_v37, 0.0 }
 0x355   : > { %606 = vadd.xlane.f32.xlu1 %v605_v38 }
 0x3da   : > { %v604_v39 = vpop.xlane.xlu0 %603 }
 0x3db   : > { %v608_v40 = vmul.f32 0.015625, %v604_v39 }
 0x3dd   : > { %v610_v0 = vsub.f32 %v3363_v33, %v608_v40 }
 0x3de   : > { %v607_v41 = vpop.xlane.xlu1 %606 }
 0x3df   : > { %v609_v42 = vmul.f32 0.015625, %v607_v41  ;;  %v612_v43 = vmul.f32 %v610_v0, %v610_v0 }
 0x3e1   : > { %v611_v44 = vsub.f32 %v3368_v37, %v609_v42  ;;  %v614_v1 = vsel %vm271_vm0, %v612_v43, 0.0 }
 0x3e2   : > { %615 = vadd.xlane.f32.xlu0 %v614_v1 }
 0x3e3   : > { %v613_v45 = vmul.f32 %v611_v44, %v611_v44 }
 0x3e5   : > { %v617_v46 = vsel %vm271_vm0, %v613_v45, 0.0 }
 0x3e6   : > { %618 = vadd.xlane.f32.xlu1 %v617_v46 }
 0x46b   : > { %v616_v60 = vpop.xlane.xlu0 %615 }
 0x46c   : > { %v620_v61 = vmul.f32 0.015625, %v616_v60 }
 0x46e   : > { %v622_v62 = vadd.f32 1e-12, %v620_v61 }
 0x46f   : > { %v619_v63 = vpop.xlane.xlu1 %618 }
 0x470   : > { %v621_v2 = vmul.f32 0.015625, %v619_v63  ;;  %2867 = vrsqrt.f32 %v622_v62 }
 0x472   : > { %v623_v3 = vadd.f32 1e-12, %v621_v2 }
 0x474   : > { %2869 = vrsqrt.f32 %v623_v3 }
 0x47d   : > { %v2868_v4 = vpop.eup %2867 }
 0x47e   : > { %v626_v6 = vmul.f32 %v2868_v4, %v610_v0 }
 0x481   : > { %v2870_v5 = vpop.eup %2869 }
 0x482   : > { %v627_v7 = vmul.f32 %v2870_v5, %v611_v44 }
 0x484   : > { %v628_v9 = vpack.c.bf16 %v627_v7, %v626_v6 }
 0x486   : > { %2388 = vmatmul.mubr.msk.bf16.vlgmr.msra.gmra.mxu0 %vm271_vm0, %v628_v9 }
 0x487   : > { %2525 = vmatpush3.bf16.msra.mxu0 %v2803_v8  ;;  %2532 = vmatprep.mubr.msk.bf16.mxu0 %vm3134_vm1, %v3133_v56  ;;  %v1075_v8 = vand.u32 127, %v310_v50 }
 0x488   : > { %2526 = vmatprep.subr.bf16.mxu0 %v3133_v56 }
 0x48b   : > { %2527 = vmatpush3.bf16.msra.mxu0 %v2804_v10 }
 0x48c   : > { %2528 = vmatprep.subr.bf16.mxu0 %v3133_v56 }
 0x48f   : > { %2529 = vmatpush3.bf16.msra.mxu0 %v2805_v11 }
 0x490   : > { %2530 = vmatprep.subr.bf16.mxu0 %v3133_v56 }
 0x493   : > { %2531 = vmatpush3.bf16.msra.mxu0 %v2806_v12 }
 0x494   : > { %2548 = vmatprep.subr.bf16.mxu0 %v3133_v56 }
 0x496   : > { %2533 = vmatmul.mubr.msk.bf16.vlgmr.msra.gmra.mxu0 %vm271_vm0, %v628_v9  ;;  %v1076_v9 = vstv %s270_s16 }
 0x497   : > { %2550 = vmatprep.mubr.msk.bf16.mxu0 %vm3134_vm1, %v3133_v56  ;;  %vm3421_vm3 = vcmp.ge.s32.totalorder %v1075_v8, %v1076_v9 }
 0x546   : > { %v746_v13 = vpop.f32.mrf.mxu0 }
 0x547   : > { %v797_v19 = vadd.f32 %v796_v14, %v746_v13 }
 0x548   : > { %v748_v15 = vpop.f32.mrf.mxu0 }
 0x549   : > { %v800_v22 = vadd.f32 %v799_v16, %v748_v15 }
 0x54a   : > { %v750_v17 = vpop.f32.mrf.mxu0 }
 0x54b   : > { %v798_v20 = vadd.f32 %v796_v14, %v750_v17 }
 0x54c   : > { %v752_v21 = vpop.f32.mrf.mxu0 }
 0x54d   : > { %v801_v23 = vadd.f32 %v799_v16, %v752_v21  ;;  %v2708_v24 = vpack.i.bf16 %v798_v20, %v797_v19  ;;  %v825_v29 = vpack.c.bf16 %v798_v20, %v797_v19 }
 0x54f   : > { %2709 = vrot.lane.b32.xlu1 %v2708_v24, %s3135_s26  ;;  %v2703_v25 = vpack.i.bf16 %v801_v23, %v800_v22  ;;  %v849_v26 = vpack.c.bf16 %v801_v23, %v800_v22 }
 0x551   : > { %2704 = vrot.lane.b32.xlu0 %v2703_v25, %s3135_s26  ;;  %v882_v27 = vsel %vm877_vm2, %v849_v26, 0 }
 0x552   : > { %2537 = vmatpush3.bf16.xpose.msra.mxu1 %v882_v27 }
 0x553   : > { %2714 = vrot.lane.b32.xlu1 %v2703_v25, %s3136_s28  ;;  %2542 = vmatprep.subr.bf16.mxu1 %v3133_v56 }
 0x555   : > { %2724 = vrot.lane.b32.xlu0 %v2708_v24, %s3136_s28 }
 0x556   : > { %v789_v28 = vpop.f32.mrf.mxu0 }
 0x557   : > { %2719 = vrot.lane.b32.xlu1 %v2703_v25, %s3137_s15  ;;  %v803_v34 = vadd.f32 %v802_v30, %v789_v28 }
 0x558   : > { %v2534_v31 = vpop.f32.mrf.mxu0 }
 0x559   : > { %2539 = vmatmul.mubr.msk.bf16.vlgmr.msra.gmra.mxu1 %vm877_vm2, %v825_v29 }
 0x55a   : > { %v792_v32 = vpop.f32.mrf.mxu0  ;;  %2544 = vmatprep.mubr.msk.bf16.mxu1 %vm3134_vm1, %v3133_v56 }
 0x55b   : > { %v804_v35 = vadd.f32 %v802_v30, %v792_v32  ;;  %2729 = vrot.lane.b32.xlu1 %v2708_v24, %s3137_s15 }
 0x55c   : > { %v2535_v36 = vpop.f32.mrf.mxu0 }
 0x55d   : > { %v873_v38 = vpack.c.bf16 %v804_v35, %v803_v34  ;;  %v3401_v39 = vpack.i.bf16 %v804_v35, %v803_v34 }
 0x5c1   : > { %v2710_v40 = vpop.permute.xlu1 %2709 }
 0x5c2   : > { %v2712_v48 = vunpack.i.h.bf16 %v2710_v40  ;;  %v2711_v55 = vunpack.i.l.bf16 %v2710_v40 }
 0x5c3   : > { %v2705_v0 = vpop.permute.xlu0 %2704 }
 0x5c4   : > { %v2707_v41 = vunpack.i.h.bf16 %v2705_v0  ;;  %v2706_v42 = vunpack.i.l.bf16 %v2705_v0  ;;  %v826_v63 = vpack.c.bf16 %v2712_v48, %v2711_v55 }
 0x5c5   : > { %v2715_v43 = vpop.permute.xlu1 %2714 }
 0x5c6   : > { %v850_v44 = vpack.c.bf16 %v2707_v41, %v2706_v42  ;;  %v2717_v1 = vunpack.i.h.bf16 %v2715_v43  ;;  %v2716_v45 = vunpack.i.l.bf16 %v2715_v43 }
 0x5c7   : > { %v2725_v49 = vpop.permute.xlu0 %2724 }
 0x5c8   : > { %v851_v46 = vpack.c.bf16 %v2717_v1, %v2716_v45  ;;  %v929_v47 = vsel %vm877_vm2, %v850_v44, 0  ;;  %v2727_v60 = vunpack.i.h.bf16 %v2725_v49  ;;  %v2726_v61 = vunpack.i.l.bf16 %v2725_v49 }
 0x5c9   : > { %v2720_v53 = vpop.permute.xlu1 %2719  ;;  %2543 = vmatpush3.bf16.xpose.msra.mxu1 %v929_v47 }
 0x5ca   : > { %v2722_v57 = vunpack.i.h.bf16 %v2720_v53  ;;  %v2721_v58 = vunpack.i.l.bf16 %v2720_v53  ;;  %v976_v59 = vsel %vm877_vm2, %v851_v46, 0  ;;  %2554 = vmatprep.subr.bf16.mxu1 %v3133_v56  ;;  %v827_v3 = vpack.c.bf16 %v2727_v60, %v2726_v61 }
 0x5cb   : > { %2549 = vmatpush3.bf16.xpose.msra.mxu0 %v976_v59 }
 0x5cc   : > { %v852_v62 = vpack.c.bf16 %v2722_v57, %v2721_v58  ;;  %2560 = vmatprep.subr.bf16.mxu0 %v3133_v56 }
 0x5cd   : > { %v2730_v2 = vpop.permute.xlu1 %2729 }
 0x5ce   : > { %v1023_v4 = vsel %vm877_vm2, %v852_v62, 0  ;;  %v2732_v5 = vunpack.i.h.bf16 %v2730_v2  ;;  %v2731_v6 = vunpack.i.l.bf16 %v2730_v2 }
 0x5d0   : > { %2545 = vmatmul.mubr.msk.bf16.vlgmr.msra.gmra.mxu1 %vm877_vm2, %v826_v63  ;;  %v828_v7 = vpack.c.bf16 %v2732_v5, %v2731_v6 }
 0x5d1   : > { %2555 = vmatpush3.bf16.xpose.msra.mxu1 %v1023_v4  ;;  %2556 = vmatprep.mubr.msk.bf16.mxu1 %vm3134_vm1, %v3133_v56 }
 0x5d2   : > { %2551 = vmatmul.mubr.msk.bf16.vlgmr.msra.gmra.mxu0 %vm877_vm2, %v827_v3  ;;  %2566 = vmatprep.subr.bf16.mxu1 %v3133_v56 }
 0x5d3   : > { %2561 = vmatpush3.bf16.msra.mxu0 %v873_v38  ;;  %2562 = vmatprep.mubr.msk.bf16.mxu0 %vm3134_vm1, %v3133_v56 }
 0x5d4   : > { %2572 = vmatprep.subr.bf16.mxu0 %v3133_v56 }
 0x5d8   : > { %2557 = vmatmul.mubr.msk.bf16.vlgmr.msra.gmra.mxu1 %vm877_vm2, %v828_v7 }
 0x5d9   : > { %2568 = vmatprep.mubr.msk.bf16.mxu1 %vm3134_vm1, %v3133_v56 }
 0x619   : > { %v918_v11 = vpop.f32.mrf.mxu1 }
 0x61a   : > { %v1066_v12 = vmul.f32 0.25, %v918_v11 }
 0x61b   : > { %v2540_v13 = vpop.f32.mrf.mxu1 }
 0x61c   : > { %v1080_v14 = vsel %vm3421_vm3, -1e+30, %v1066_v12 }
 0x61d   : > { %v921_v15 = vpop.f32.mrf.mxu1  ;;  %v1088_v16 = vsel %vm877_vm2, %v1080_v14, -inf }
 0x61e   : > { %v1067_v17 = vmul.f32 0.25, %v921_v15  ;;  %1089 = vmax.xlane.f32.xlu0 %v1088_v16 }
 0x61f   : > { %v2541_v19 = vpop.f32.mrf.mxu1 }
 0x620   : > { %v1081_v50 = vsel %vm3421_vm3, -1e+30, %v1067_v17 }
 0x621   : > { %v1091_v20 = vsel %vm877_vm2, %v1081_v50, -inf }
 0x622   : > { %1092 = vmax.xlane.f32.xlu1 %v1091_v20 }
 0x690   : > { %v965_v21 = vpop.f32.mrf.mxu1 }
 0x691   : > { %v1068_v22 = vmul.f32 0.25, %v965_v21 }
 0x692   : > { %v2546_v23 = vpop.f32.mrf.mxu1  ;;  %v1012_v24 = vpop.f32.mrf.mxu0 }
 0x693   : > { %v1082_v25 = vsel %vm3421_vm3, -1e+30, %v1068_v22  ;;  %v1070_v29 = vmul.f32 0.25, %v1012_v24 }
 0x694   : > { %v968_v26 = vpop.f32.mrf.mxu1  ;;  %v2552_v27 = vpop.f32.mrf.mxu0  ;;  %v1094_v28 = vsel %vm877_vm2, %v1082_v25, -inf }
 0x695   : > { %v1069_v30 = vmul.f32 0.25, %v968_v26  ;;  %1095 = vmax.xlane.f32.xlu0 %v1094_v28  ;;  %v1084_v42 = vsel %vm3421_vm3, -1e+30, %v1070_v29 }
 0x696   : > { %v2547_v31 = vpop.f32.mrf.mxu1  ;;  %v1015_v32 = vpop.f32.mrf.mxu0  ;;  %v1100_v45 = vsel %vm877_vm2, %v1084_v42, -inf }
 0x697   : > { %v1071_v34 = vmul.f32 0.25, %v1015_v32  ;;  %v1083_v35 = vsel %vm3421_vm3, -1e+30, %v1069_v30 }
 0x698   : > { %v2553_v36 = vpop.f32.mrf.mxu0  ;;  %v1059_v38 = vpop.f32.mrf.mxu1  ;;  %v1097_v40 = vsel %vm877_vm2, %v1083_v35, -inf }
 0x699   : > { %v1072_v0 = vmul.f32 0.25, %v1059_v38  ;;  %1098 = vmax.xlane.f32.xlu0 %v1097_v40  ;;  %v1085_v41 = vsel %vm3421_vm3, -1e+30, %v1071_v34 }
 0x69a   : > { %v2558_v43 = vpop.f32.mrf.mxu1  ;;  %v1103_v44 = vsel %vm877_vm2, %v1085_v41, -inf }
 0x69b   : > { %1104 = vmax.xlane.f32.xlu1 %v1103_v44  ;;  %v1086_v47 = vsel %vm3421_vm3, -1e+30, %v1072_v0 }
 0x69c   : > { %v1062_v1 = vpop.f32.mrf.mxu1  ;;  %v1106_v53 = vsel %vm877_vm2, %v1086_v47, -inf }
 0x69d   : > { %v1073_v46 = vmul.f32 0.25, %v1062_v1  ;;  %1101 = vmax.xlane.f32.xlu0 %v1100_v45 }
 0x69e   : > { %v2559_v48 = vpop.f32.mrf.mxu1 }
 0x69f   : > { %v3447_v49 = vsel %vm3421_vm3, -1e+30, %v1073_v46 }
 0x6a0   : > { %v1109_v55 = vsel %vm877_vm2, %v3447_v49, -inf }
 0x6a1   : > { %1107 = vmax.xlane.f32.xlu0 %v1106_v53  ;;  %1110 = vmax.xlane.f32.xlu1 %v1109_v55 }
 0x6a7   : > { %v1090_v57 = vpop.xlane.xlu0 %1089 }
 0x6a8   : > { %v1112_v58 = vsub.f32 %v1080_v14, %v1090_v57 }
 0x6aa   : > { %v1120_v59 = vmul.f32 1.442695, %v1112_v58 }
 0x6ab   : > { %v1093_v60 = vpop.xlane.xlu1 %1092 }
 0x6ac   : > { %2871 = vpow2.f32 %v1120_v59  ;;  %v1113_v61 = vsub.f32 %v1081_v50, %v1093_v60 }
 0x6ae   : > { %v1122_v62 = vmul.f32 1.442695, %v1113_v61 }
 0x6b0   : > { %2873 = vpow2.f32 %v1122_v62 }
 0x6b9   : > { %v2872_v63 = vpop.eup %2871 }
 0x6ba   : > { %v1136_v2 = vsel %vm877_vm2, %v2872_v63, 0.0 }
 0x6bb   : > { %1137 = vadd.xlane.f32.xlu0 %v1136_v2 }
 0x6bd   : > { %v2874_v3 = vpop.eup %2873 }
 0x6be   : > { %v1139_v4 = vsel %vm877_vm2, %v2874_v3, 0.0 }
 0x6bf   : > { %1140 = vadd.xlane.f32.xlu1 %v1139_v4 }
 0x71e   : > { %v1096_v5 = vpop.xlane.xlu0 %1095 }
 0x71f   : > { %v1114_v6 = vsub.f32 %v1082_v25, %v1096_v5 }
 0x721   : > { %v1124_v7 = vmul.f32 1.442695, %v1114_v6 }
 0x722   : > { %v1099_v8 = vpop.xlane.xlu0 %1098 }
 0x723   : > { %2875 = vpow2.f32 %v1124_v7  ;;  %v1115_v9 = vsub.f32 %v1083_v35, %v1099_v8 }
 0x724   : > { %v1105_v11 = vpop.xlane.xlu1 %1104 }
 0x725   : > { %v1126_v12 = vmul.f32 1.442695, %v1115_v9  ;;  %v1117_v13 = vsub.f32 %v1085_v41, %v1105_v11 }
 0x726   : > { %v1102_v14 = vpop.xlane.xlu0 %1101 }
 0x727   : > { %2877 = vpow2.f32 %v1126_v12  ;;  %v1130_v15 = vmul.f32 1.442695, %v1117_v13  ;;  %v1116_v16 = vsub.f32 %v1084_v42, %v1102_v14 }
 0x729   : > { %2879 = vpow2.f32 %v1130_v15  ;;  %v1128_v17 = vmul.f32 1.442695, %v1116_v16 }
 0x72a   : > { %v1108_v19 = vpop.xlane.xlu0 %1107  ;;  %v1111_v31 = vpop.xlane.xlu1 %1110 }
 0x72b   : > { %2881 = vpow2.f32 %v1128_v17  ;;  %v1118_v50 = vsub.f32 %v1086_v47, %v1108_v19  ;;  %v1119_v40 = vsub.f32 %v3447_v49, %v1111_v31 }
 0x72d   : > { %v1132_v20 = vmul.f32 1.442695, %v1118_v50  ;;  %v1134_v43 = vmul.f32 1.442695, %v1119_v40 }
 0x72f   : > { %2883 = vpow2.f32 %v1132_v20 }
 0x730   : > { %v2876_v21 = vpop.eup %2875 }
 0x731   : > { %v1142_v22 = vsel %vm877_vm2, %v2876_v21, 0.0 }
 0x732   : > { %1143 = vadd.xlane.f32.xlu0 %v1142_v22 }
 0x734   : > { %v2878_v23 = vpop.eup %2877 }
 0x735   : > { %v1145_v24 = vsel %vm877_vm2, %v2878_v23, 0.0 }
 0x736   : > { %v3456_v25 = vpop.eup %2879  ;;  %1146 = vadd.xlane.f32.xlu1 %v1145_v24 }
 0x737   : > { %v1151_v28 = vsel %vm877_vm2, %v3456_v25, 0.0 }
 0x738   : > { %v2882_v26 = vpop.eup %2881 }
 0x739   : > { %v1148_v27 = vsel %vm877_vm2, %v2882_v26, 0.0 }
 0x73a   : > { %1149 = vadd.xlane.f32.xlu0 %v1148_v27  ;;  %1152 = vadd.xlane.f32.xlu1 %v1151_v28 }
 0x73c   : > { %v3461_v29 = vpop.eup %2883 }
 0x73d   : > { %v1154_v30 = vsel %vm877_vm2, %v3461_v29, 0.0 }
 0x73e   : > { %1155 = vadd.xlane.f32.xlu0 %v1154_v30 }
 0x744   : > { %v1138_v32 = vpop.xlane.xlu0 %1137 }
 0x745   : > { %2885 = vrcp.f32 %v1138_v32 }
 0x748   : > { %v1141_v34 = vpop.xlane.xlu1 %1140 }
 0x749   : > { %2887 = vrcp.f32 %v1141_v34 }
 0x74a   : > { %2889 = vpow2.f32 %v1134_v43 }
 0x74b   : > { %2739 = vrot.lane.b32.xlu1 %v3401_v39, %s3136_s28 }
 0x752   : > { %v2886_v35 = vpop.eup %2885 }
 0x753   : > { %v1168_v36 = vmul.f32 %v2886_v35, %v2872_v63  ;;  %v2807_v35 = vld [vmem:[#allocation7 + $0x12c] ss:$44 sps:$4 sm:$0xff]  }
 0x754   : > { %2734 = vrot.lane.b32.xlu0 %v3401_v39, %s3135_s26  ;;  %s3051_s26 = scalar_lea.vmem %s3050_s30, 512 }
 0x755   : > { %v1176_v41 = vsel %vm3421_vm3, 0.0, %v1168_v36  ;;  %v2808_v36 = vld [vmem:[#allocation7 + $0xd4] ss:$44 sps:$4 sm:$0xff]   ;;  %p3053_p2 = scmp.lt.s32.totalorder %s3051_s26, %s3045_s14 }
 0x756   : > { %v2888_v38 = vpop.eup %2887 }
 0x757   : > { %v1169_v0 = vmul.f32 %v2888_v38, %v2874_v3  ;;  %v2890_v1 = vpop.eup %2889  ;;  %p3054_p3 = por %p3053_p2, %p3052_p1 }
 0x758   : > { %v1157_v45 = vsel %vm877_vm2, %v2890_v1, 0.0 }
 0x759   : > { %v1177_v42 = vsel %vm3421_vm3, 0.0, %v1169_v0  ;;  %p3055_p9 = pnand %p3054_p3, %p3048_p10 }
 0x75a   : > { %v1184_v44 = vpack.c.bf16 %v1177_v42, %v1176_v41  ;;  %v2809_v42 = vld [vmem:[#allocation7 + $0x7c] ss:$44 sps:$4 sm:$0xff]  }
 0x75c   : > { %2563 = vmatmul.mubr.msk.bf16.vlgmr.msra.gmra.mxu0 %vm877_vm2, %v1184_v44 }
 0x75d   : > { %2574 = vmatprep.mubr.msk.bf16.mxu0 %vm3134_vm1, %v3133_v56 }
 0x76f   : > { %1158 = vadd.xlane.f32.xlu1 %v1157_v45  ;;  %v2810_v45 = vld [vmem:[#allocation7 + $0x24] ss:$44 sps:$4 sm:$0xff]  }
 0x780   : > { %2744 = vrot.lane.b32.xlu1 %v3401_v39, %s3137_s15 }
 0x7bb   : > { %v1144_v46 = vpop.xlane.xlu0 %1143 }
 0x7bc   : > { %2891 = vrcp.f32 %v1144_v46 }
 0x7bf   : > { %v1147_v47 = vpop.xlane.xlu1 %1146 }
 0x7c0   : > { %2893 = vrcp.f32 %v1147_v47 }
 0x7c3   : > { %v1150_v48 = vpop.xlane.xlu0 %1149  ;;  %v1153_v49 = vpop.xlane.xlu1 %1152 }
 0x7c4   : > { %2895 = vrcp.f32 %v1150_v48 }
 0x7c5   : > { %2897 = vrcp.f32 %v1153_v49 }
 0x7c7   : > { %v1156_v53 = vpop.xlane.xlu0 %1155  ;;  %v2740_v55 = vpop.permute.xlu1 %2739 }
 0x7c8   : > { %v2742_v57 = vunpack.i.h.bf16 %v2740_v55  ;;  %v2741_v58 = vunpack.i.l.bf16 %v2740_v55  ;;  %2899 = vrcp.f32 %v1156_v53 }
 0x7c9   : > { %v2892_v59 = vpop.eup %2891 }
 0x7ca   : > { %v875_v60 = vpack.c.bf16 %v2742_v57, %v2741_v58  ;;  %v1170_v62 = vmul.f32 %v2892_v59, %v2876_v21 }
 0x7cb   : > { %v2735_v61 = vpop.permute.xlu0 %2734 }
 0x7cc   : > { %v2737_v63 = vunpack.i.h.bf16 %v2735_v61  ;;  %v2736_v2 = vunpack.i.l.bf16 %v2735_v61  ;;  %2573 = vmatpush3.bf16.msra.mxu0 %v875_v60  ;;  %v1178_v5 = vsel %vm3421_vm3, 0.0, %v1170_v62 }
 0x7cd   : > { %v2894_v39 = vpop.eup %2893  ;;  %2584 = vmatprep.subr.bf16.mxu0 %v3133_v56 }
 0x7ce   : > { %v1171_v3 = vmul.f32 %v2894_v39, %v2878_v23  ;;  %v874_v4 = vpack.c.bf16 %v2737_v63, %v2736_v2 }
 0x7d0   : > { %2567 = vmatpush3.bf16.msra.mxu1 %v874_v4  ;;  %v1179_v6 = vsel %vm3421_vm3, 0.0, %v1171_v3 }
 0x7d1   : > { %v2896_v7 = vpop.eup %2895  ;;  %v1185_v8 = vpack.c.bf16 %v1179_v6, %v1178_v5  ;;  %2578 = vmatprep.subr.bf16.mxu1 %v3133_v56 }
 0x7d2   : > { %v2898_v9 = vpop.eup %2897  ;;  %v1172_v11 = vmul.f32 %v2896_v7, %v2882_v26 }
 0x7d3   : > { %v1173_v12 = vmul.f32 %v2898_v9, %v3456_v25  ;;  %2569 = vmatmul.mubr.msk.bf16.vlgmr.msra.gmra.mxu1 %vm877_vm2, %v1185_v8 }
 0x7d4   : > { %v1180_v13 = vsel %vm3421_vm3, 0.0, %v1172_v11  ;;  %2580 = vmatprep.mubr.msk.bf16.mxu1 %vm3134_vm1, %v3133_v56  ;;  %v1475_v11 = vld [vmem:[#allocation10 + $0x6] ss:$0 sm:$0xff] }
 0x7d5   : > { %v1181_v14 = vsel %vm3421_vm3, 0.0, %v1173_v12  ;;  %v2900_v21 = vpop.eup %2899 }
 0x7d6   : > { %v1186_v15 = vpack.c.bf16 %v1181_v14, %v1180_v13  ;;  %v1174_v22 = vmul.f32 %v2900_v21, %v3461_v29 }
 0x7d8   : > { %2575 = vmatmul.mubr.msk.bf16.vlgmr.msra.gmra.mxu0 %vm877_vm2, %v1186_v15  ;;  %v1182_v25 = vsel %vm3421_vm3, 0.0, %v1174_v22 }
 0x7d9   : > { %2592 = vmatprep.mubr.msk.bf16.mxu0 %vm3134_vm1, %v3133_v56  ;;  %2585 = vmatpush3.bf16.msra.mxu0 %v2807_v35  ;;  %v2819_v35 = vld [vmem:[#allocation7 + $0x6c] ss:$44 sps:$4 sm:$0xff]  }
 0x7da   : > { %2586 = vmatprep.subr.bf16.mxu0 %v3133_v56 }
 0x7dd   : > { %2587 = vmatpush3.bf16.msra.mxu0 %v2808_v36  ;;  %v2822_v36 = vld [vmem:[#allocation7 + $0x14] ss:$44 sps:$4 sm:$0xff]  }
 0x7de   : > { %2588 = vmatprep.subr.bf16.mxu0 %v3133_v56 }
 0x7e1   : > { %2589 = vmatpush3.bf16.msra.mxu0 %v2809_v42 }
 0x7e2   : > { %2590 = vmatprep.subr.bf16.mxu0 %v3133_v56 }
 0x7e5   : > { %2591 = vmatpush3.bf16.msra.mxu0 %v2810_v45 }
 0x7e6   : > { %2596 = vmatprep.subr.bf16.mxu0 %v3133_v56 }
 0x7f8   : > { %v1159_v16 = vpop.xlane.xlu1 %1158 }
 0x7f9   : > { %2901 = vrcp.f32 %v1159_v16 }
 0x7fc   : > { %v2745_v17 = vpop.permute.xlu1 %2744 }
 0x7fd   : > { %v2747_v19 = vunpack.i.h.bf16 %v2745_v17  ;;  %v2746_v50 = vunpack.i.l.bf16 %v2745_v17 }
 0x7ff   : > { %v876_v20 = vpack.c.bf16 %v2747_v19, %v2746_v50 }
 0x801   : > { %2579 = vmatpush3.bf16.msra.mxu1 %v876_v20 }
 0x806   : > { %v2902_v23 = vpop.eup %2901 }
 0x807   : > { %v1175_v24 = vmul.f32 %v2902_v23, %v2890_v1 }
 0x809   : > { %v1183_v26 = vsel %vm3421_vm3, 0.0, %v1175_v24 }
 0x80a   : > { %v1187_v27 = vpack.c.bf16 %v1183_v26, %v1182_v25 }
 0x80c   : > { %2581 = vmatmul.mubr.msk.bf16.vlgmr.msra.gmra.mxu1 %vm877_vm2, %v1187_v27 }
 0x80d   : > { %1601 = vmatprep.mubr.bf16.mxu1 %v3132_v18 }
 0x81c   : > { %v1225_v28 = vpop.f32.mrf.mxu0 }
 0x81e   : > { %v2564_v30 = vpop.f32.mrf.mxu0 }
 0x81f   : > { %v2811_v30 = vld [vmem:[#allocation7 + $0x118] ss:$44 sps:$4 sm:$0xff]  }
 0x820   : > { %v1228_v31 = vpop.f32.mrf.mxu0 }
 0x822   : > { %v2565_v32 = vpop.f32.mrf.mxu0 }
 0x823   : > { %v2816_v32 = vld [vmem:[#allocation7 + $0xc4] ss:$44 sps:$4 sm:$0xff]  }
 0x893   : > { %v1269_v34 = vpop.f32.mrf.mxu1 }
 0x895   : > { %v2570_v29 = vpop.f32.mrf.mxu1 }
 0x896   : > { %v2817_v29 = vld [vmem:[#allocation7 + $0x68] ss:$44 sps:$4 sm:$0xff]  }
 0x897   : > { %v1272_v38 = vpop.f32.mrf.mxu1 }
 0x898   : > { %v2748_v40 = vpack.i.bf16 %v1272_v38, %v1269_v34  ;;  %v1313_v10 = vpop.f32.mrf.mxu0  ;;  %v2814_v34 = vld [vmem:[#allocation7 + $0xc0] ss:$44 sps:$4 sm:$0xff]   ;;  %v2820_v38 = vld [vmem:[#allocation7 + $0x10] ss:$44 sps:$4 sm:$0xff]  }
 0x899   : > { %v2571_v0 = vpop.f32.mrf.mxu1 }
 0x89a   : > { %v2576_v41 = vpop.f32.mrf.mxu0  ;;  %2749 = vrot.lane.b32.xlu1 %v2748_v40, %s3138_s20 }
 0x89c   : > { %v1316_v43 = vpop.f32.mrf.mxu0 }
 0x89d   : > { %v2753_v44 = vpack.i.bf16 %v1316_v43, %v1313_v10 }
 0x89e   : > { %v2577_v1 = vpop.f32.mrf.mxu0 }
 0x89f   : > { %2754 = vrot.lane.b32.xlu0 %v2753_v44, %s3139_s29 }
 0x8cc   : > { %v1357_v46 = vpop.f32.mrf.mxu1 }
 0x8ce   : > { %v2582_v47 = vpop.f32.mrf.mxu1 }
 0x8d0   : > { %v1360_v48 = vpop.f32.mrf.mxu1 }
 0x8d1   : > { %v2758_v49 = vpack.i.bf16 %v1360_v48, %v1357_v46  ;;  %v2823_v48 = vld [vmem:[#allocation7 + $0x130] ss:$44 sps:$4 sm:$0xff]  }
 0x8d2   : > { %v2583_v53 = vpop.f32.mrf.mxu1 }
 0x8d3   : > { %2759 = vrot.lane.b32.xlu1 %v2758_v49, %s3140_s7  ;;  %v2824_v49 = vld [vmem:[#allocation7 + $0xd8] ss:$44 sps:$4 sm:$0xff]   ;;  %v2825_v53 = vld [vmem:[#allocation7 + $0x80] ss:$44 sps:$4 sm:$0xff]  }
 0x90c   : > { %v2750_v55 = vpop.permute.xlu1 %2749 }
 0x90d   : > { %v2752_v58 = vunpack.i.h.bf16 %v2750_v55  ;;  %v2751_v59 = vunpack.i.l.bf16 %v2750_v55  ;;  %v2826_v55 = vld [vmem:[#allocation7 + $0x28] ss:$44 sps:$4 sm:$0xff]  }
 0x90f   : > { %v1388_v63 = vsel %vm877_vm2, %v1225_v28, %v2751_v59  ;;  %v1389_v2 = vsel %vm877_vm2, %v1228_v31, %v2752_v58  ;;  %v2813_v31 = vld [vmem:[#allocation7 + $0x11c] ss:$44 sps:$4 sm:$0xff]  }
 0x910   : > { %1577 = vmatprep.subr.bf16.mxu1 %v2813_v31 }
 0x911   : > { %v2755_v57 = vpop.permute.xlu0 %2754  ;;  %1578 = vmatpush1.bf16.msra.mxu1 %v2811_v30 }
 0x912   : > { %v2757_v60 = vunpack.i.h.bf16 %v2755_v57  ;;  %v2756_v61 = vunpack.i.l.bf16 %v2755_v57  ;;  %1579 = vmatprep.subr.bf16.mxu1 %v2816_v32  ;;  %v1514_v57 = vld [vmem:[#allocation10 + $0x2] ss:$8 sm:$0x3] }
 0x913   : > { %v1523_v58 = vrot.slane %v1514_v57, %v3358_v54 }
 0x914   : > { %v1392_v4 = vsel %vm1390_vm4, %v1389_v2, %v2757_v60  ;;  %v1391_v5 = vsel %vm1390_vm4, %v1388_v63, %v2756_v61 }
 0x915   : > { %1580 = vmatpush1.bf16.msra.mxu1 %v2814_v34 }
 0x916   : > { %1581 = vmatprep.subr.bf16.mxu1 %v2819_v35 }
 0x919   : > { %1582 = vmatpush1.bf16.msra.mxu1 %v2817_v29 }
 0x91a   : > { %1583 = vmatprep.subr.bf16.mxu1 %v2822_v36 }
 0x91d   : > { %1584 = vmatpush1.bf16.msra.mxu1 %v2820_v38 }
 0x945   : > { %v2760_v62 = vpop.permute.xlu1 %2759 }
 0x946   : > { %v2762_v39 = vunpack.i.h.bf16 %v2760_v62  ;;  %v2761_v3 = vunpack.i.l.bf16 %v2760_v62 }
 0x948   : > { %v1394_v6 = vsel %vm1393_vm5, %v1391_v5, %v2761_v3  ;;  %v1395_v7 = vsel %vm1393_vm5, %v1392_v4, %v2762_v39  ;;  %v1519_v3 = vrot.slane %v1514_v57, %v3355_v52 }
 0x949   : > { %v1396_v8 = vpack.c.bf16 %v1395_v7, %v1394_v6 }
 0x94b   : > { %2593 = vmatmul.mubr.msk.bf16.vlgmr.msra.gmra.mxu0 %vm271_vm0, %v1396_v8  ;;  %v1664_v8 = vsub.s32 2, %v3352_v51 }
 0x94c   : > { %2604 = vmatprep.mubr.msk.bf16.mxu0 %vm3134_vm1, %v3133_v56  ;;  %2597 = vmatpush3.bf16.msra.mxu0 %v2823_v48 }
 0x94d   : > { %2598 = vmatprep.subr.bf16.mxu0 %v3133_v56 }
 0x950   : > { %2599 = vmatpush3.bf16.msra.mxu0 %v2824_v49 }
 0x951   : > { %2600 = vmatprep.subr.bf16.mxu0 %v3133_v56 }
 0x954   : > { %2601 = vmatpush3.bf16.msra.mxu0 %v2825_v53 }
 0x955   : > { %2602 = vmatprep.subr.bf16.mxu0 %v3133_v56 }
 0x958   : > { %2603 = vmatpush3.bf16.msra.mxu0 %v2826_v55 }
 0xa0b   : > { %v1466_v9 = vpop.f32.mrf.mxu0 }
 0xa0c   : > { %v1473_v12 = vadd.f32 %v1466_v9, %v3363_v33  ;;  %v1622_v9 = vld [vmem:[#allocation10 + $0x20] sm:$0x7f] }
 0xa0d   : > { %v2594_v13 = vpop.f32.mrf.mxu0 }
 0xa0e   : > { %v3514_v14 = vadd.f32 %v1475_v11, %v1473_v12  ;;  %v1684_v12 = vsub.s32 3, %v3352_v51  ;;  %v1704_v13 = vsub.s32 4, %v3352_v51 }
 0xa0f   : > { %v1469_v15 = vpop.f32.mrf.mxu0 }
 0xa10   : > { %v1474_v16 = vadd.f32 %v1469_v15, %v3368_v37  ;;  %v1478_v17 = vsel %vm271_vm0, %v3514_v14, 0.0 }
 0xa11   : > { %1479 = vadd.xlane.f32.xlu0 %v1478_v17  ;;  %v2595_v19 = vpop.f32.mrf.mxu0 }
 0xa12   : > { %v3519_v50 = vadd.f32 %v1475_v11, %v1474_v16  ;;  %v1724_v16 = vsub.s32 5, %v3352_v51  ;;  %v1743_v19 = vsub.s32 6, %v3352_v51 }
 0xa14   : > { %v1481_v20 = vsel %vm271_vm0, %v3519_v50, 0.0 }
 0xa15   : > { %1482 = vadd.xlane.f32.xlu1 %v1481_v20 }
 0xa9a   : > { %v1480_v21 = vpop.xlane.xlu0 %1479 }
 0xa9b   : > { %v1484_v22 = vmul.f32 0.015625, %v1480_v21 }
 0xa9d   : > { %v1486_v33 = vsub.f32 %v3514_v14, %v1484_v22  ;;  %v1637_v22 = vrot.slane %v1622_v9, %v3355_v52 }
 0xa9e   : > { %v1483_v23 = vpop.xlane.xlu1 %1482 }
 0xa9f   : > { %v1485_v24 = vmul.f32 0.015625, %v1483_v23  ;;  %v1488_v25 = vmul.f32 %v1486_v33, %v1486_v33  ;;  %v1665_v23 = vrot.slane %v1622_v9, %v1664_v8 }
 0xaa1   : > { %v1487_v37 = vsub.f32 %v3519_v50, %v1485_v24  ;;  %v1490_v26 = vsel %vm271_vm0, %v1488_v25, 0.0  ;;  %v1685_v25 = vrot.slane %v1622_v9, %v1684_v12 }
 0xaa2   : > { %1491 = vadd.xlane.f32.xlu0 %v1490_v26 }
 0xaa3   : > { %v1489_v27 = vmul.f32 %v1487_v37, %v1487_v37 }
 0xaa5   : > { %v1493_v28 = vsel %vm271_vm0, %v1489_v27, 0.0  ;;  %v1725_v27 = vrot.slane %v1622_v9, %v1724_v16 }
 0xaa6   : > { %1494 = vadd.xlane.f32.xlu0 %v1493_v28  ;;  %v1744_v28 = vrot.slane %v1622_v9, %v1743_v19 }
 0xb2b   : > { %v1492_v40 = vpop.xlane.xlu0 %1491 }
 0xb2c   : > { %v1496_v10 = vmul.f32 0.015625, %v1492_v40 }
 0xb2e   : > { %v1498_v0 = vadd.f32 1e-12, %v1496_v10 }
 0xb2f   : > { %v1495_v41 = vpop.xlane.xlu0 %1494 }
 0xb30   : > { %v1497_v42 = vmul.f32 0.015625, %v1495_v41  ;;  %2903 = vrsqrt.f32 %v1498_v0 }
 0xb32   : > { %v1499_v43 = vadd.f32 1e-12, %v1497_v42 }
 0xb34   : > { %2905 = vrsqrt.f32 %v1499_v43 }
 0xb3d   : > { %v2904_v44 = vpop.eup %2903 }
 0xb3e   : > { %v1502_v45 = vmul.f32 %v2904_v44, %v1486_v33  ;;  %v1645_v33 = vrot.slane %v1622_v9, %v3358_v54 }
 0xb41   : > { %v2906_v1 = vpop.eup %2905 }
 0xb42   : > { %v1503_v46 = vmul.f32 %v2906_v1, %v1487_v37  ;;  %v1705_v37 = vrot.slane %v1622_v9, %v1704_v13 }
 0xb44   : > { %v1504_v47 = vpack.c.bf16 %v1503_v46, %v1502_v45 }
 0xb46   : > { %2411 = vmatmul.mubr.msk.bf16.vlgmr.msra.gmra.mxu1 %vm271_vm0, %v1504_v47 }
 0xb47   : > { %1979 = vmatprep.mubr.bf16.mxu1 %v3132_v18 }
 0xc06   : > { %v1603_v59 = vpop.f32.mrf.mxu1 }
 0xc07   : > { %v1604_v6 = vadd.f32 %v1603_v59, %v1519_v3 }
 0xc08   : > { %v1605_v60 = vpop.f32.mrf.mxu1 }
 0xc09   : > { %v1606_v18 = vadd.f32 %v1605_v60, %v1523_v58 }
 0xc0a   : > { %v1607_v61 = vpop.f32.mrf.mxu1 }
 0xc0b   : > { %v1612_v62 = vmul.f32 0.5, %v1606_v18  ;;  %v1608_v20 = vadd.f32 %v1607_v61, %v1519_v3 }
 0xc0c   : > { %v1609_v63 = vpop.f32.mrf.mxu1 }
 0xc0d   : > { %2907 = vtanh.f32 %v1612_v62  ;;  %v1610_v2 = vadd.f32 %v1609_v63, %v1523_v58 }
 0xc0f   : > { %v1613_v39 = vmul.f32 0.5, %v1610_v2 }
 0xc11   : > { %2909 = vtanh.f32 %v1613_v39 }
 0xc1a   : > { %v2908_v4 = vpop.eup %2907 }
 0xc1b   : > { %v1616_v5 = vmul.f32 0.5, %v2908_v4 }
 0xc1d   : > { %v1618_v56 = vadd.f32 0.5, %v1616_v5 }
 0xc1e   : > { %v2910_v7 = vpop.eup %2909 }
 0xc1f   : > { %v1620_v11 = vmul.f32 %v1618_v56, %v1604_v6  ;;  %v1617_v15 = vmul.f32 0.5, %v2910_v7 }
 0xc21   : > { %v1626_v17 = vrot.slane %v1620_v11, 5  ;;  %v1619_v21 = vadd.f32 0.5, %v1617_v15 }
 0xc23   : > { %v1632_v24 = vsel %vm1625_vm6, 0.0, %v1626_v17  ;;  %v1621_v26 = vmul.f32 %v1619_v21, %v1608_v20 }
 0xc24   : > { %v1638_v31 = vmul.f32 %v1637_v22, %v1632_v24  ;;  %v1646_v32 = vmul.f32 %v1645_v33, %v1632_v24  ;;  %v1666_v51 = vmul.f32 %v1665_v23, %v1632_v24  ;;  %v1686_v34 = vmul.f32 %v1685_v25, %v1632_v24 }
 0xc25   : > { %v1627_v30 = vrot.slane %v1621_v26, 5  ;;  %v1706_v35 = vmul.f32 %v1705_v37, %v1632_v24  ;;  %v1726_v36 = vmul.f32 %v1725_v27, %v1632_v24  ;;  %v1745_v1 = vmul.f32 %v1744_v28, %v1632_v24 }
 0xc26   : > { %v1653_v44 = vrot.slane %v1646_v32, 1  ;;  %v1673_v60 = vrot.slane %v1666_v51, 2  ;;  %v1693_v63 = vrot.slane %v1686_v34, 3  ;;  %v1761_v51 = vld [vmem:[#allocation10 + $0x12] ss:$0 sm:$0xff] }
 0xc27   : > { %v1628_v29 = vsel %vm1625_vm6, %v1626_v17, %v1627_v30  ;;  %v1633_v38 = vsel %vm1625_vm6, %v1627_v30, 0.0  ;;  %v1713_v7 = vrot.slane %v1706_v35, 4  ;;  %v1732_v17 = vrot.slane %v1726_v36, 5 }
 0xc28   : > { %v1647_v40 = vmul.f32 %v1645_v33, %v1628_v29  ;;  %v1667_v10 = vmul.f32 %v1665_v23, %v1628_v29  ;;  %v1648_v0 = vmul.f32 %v1645_v33, %v1633_v38  ;;  %v1668_v41 = vmul.f32 %v1665_v23, %v1633_v38 }
 0xc29   : > { %v1687_v42 = vmul.f32 %v1685_v25, %v1628_v29  ;;  %v1688_v43 = vmul.f32 %v1685_v25, %v1633_v38  ;;  %v1707_v46 = vmul.f32 %v1705_v37, %v1628_v29  ;;  %v1708_v53 = vmul.f32 %v1705_v37, %v1633_v38 }
 0xc2a   : > { %v1654_v45 = vrot.slane %v1647_v40, 1  ;;  %v1656_v47 = vrot.slane %v1648_v0, 1  ;;  %v1674_v48 = vrot.slane %v1667_v10, 2  ;;  %v1676_v49 = vrot.slane %v1668_v41, 2 }
 0xc2b   : > { %v1639_v55 = vmul.f32 %v1637_v22, %v1628_v29  ;;  %v1694_v58 = vrot.slane %v1687_v42, 3  ;;  %v1696_v59 = vrot.slane %v1688_v43, 3  ;;  %v1727_v61 = vmul.f32 %v1725_v27, %v1628_v29 }
 0xc2c   : > { %v1655_v57 = vsel %vm1652_vm7, %v1653_v44, %v1654_v45  ;;  %v1657_v18 = vsel %vm1652_vm7, %v1654_v45, %v1656_v47  ;;  %v1728_v62 = vmul.f32 %v1725_v27, %v1633_v38  ;;  %v1714_v39 = vrot.slane %v1707_v46, 4 }
 0xc2d   : > { %v1661_v2 = vadd.f32 %v1657_v18, %v1639_v55  ;;  %v1660_v3 = vadd.f32 %v1655_v57, %v1638_v31  ;;  %v1677_v4 = vsel %vm1672_vm8, %v1674_v48, %v1676_v49  ;;  %v1716_v5 = vrot.slane %v1708_v53, 4 }
 0xc2e   : > { %v1747_v6 = vmul.f32 %v1744_v28, %v1633_v38  ;;  %v1675_v56 = vsel %vm1672_vm8, %v1673_v60, %v1674_v48  ;;  %v1697_v9 = vsel %vm1692_vm9, %v1694_v58, %v1696_v59  ;;  %v1733_v12 = vrot.slane %v1727_v61, 5  ;;  %v1853_v48 = vld [vmem:[#allocation10 + $0x11] ss:$0 sm:$0xff] }
 0xc2f   : > { %v1681_v8 = vadd.f32 %v1677_v4, %v1661_v2  ;;  %v1680_v11 = vadd.f32 %v1675_v56, %v1660_v3  ;;  %v1735_v13 = vrot.slane %v1728_v62, 5  ;;  %v1695_v15 = vsel %vm1692_vm9, %v1693_v63, %v1694_v58  ;;  %v2827_v56 = vld [vmem:[#allocation7 + $0x110] ss:$44 sps:$4 sm:$0xff]  }
 0xc30   : > { %v1746_v16 = vmul.f32 %v1744_v28, %v1628_v29  ;;  %v1755_v21 = vrot.slane %v1747_v6, 6  ;;  %v1715_v22 = vsel %vm1712_vm10, %v1713_v7, %v1714_v39  ;;  %v1717_v33 = vsel %vm1712_vm10, %v1714_v39, %v1716_v5  ;;  %v2829_v7 = vld [vmem:[#allocation7 + $0x114] ss:$44 sps:$4 sm:$0xff]  }
 0xc31   : > { %v1700_v19 = vadd.f32 %v1695_v15, %v1680_v11  ;;  %v1701_v20 = vadd.f32 %v1697_v9, %v1681_v8  ;;  %v1752_v37 = vrot.slane %v1745_v1, 6  ;;  %v1734_v26 = vsel %vm1625_vm6, %v1732_v17, %v1733_v12  ;;  %v2832_v8 = vld [vmem:[#allocation7 + $0xbc] ss:$44 sps:$4 sm:$0xff]   ;;  %1955 = vmatprep.subr.bf16.mxu1 %v2829_v7  ;;  %v2830_v9 = vld [vmem:[#allocation7 + $0xb8] ss:$44 sps:$4 sm:$0xff]  }
 0xc32   : > { %v1753_v23 = vrot.slane %v1746_v16, 6  ;;  %v1736_v27 = vsel %vm1625_vm6, %v1733_v12, %v1735_v13  ;;  %1956 = vmatpush1.bf16.msra.mxu1 %v2827_v56  ;;  %v2835_v11 = vld [vmem:[#allocation7 + $0x64] ss:$44 sps:$4 sm:$0xff]   ;;  %v2833_v12 = vld [vmem:[#allocation7 + $0x60] ss:$44 sps:$4 sm:$0xff]  }
 0xc33   : > { %v1720_v24 = vadd.f32 %v1715_v22, %v1700_v19  ;;  %v1721_v25 = vadd.f32 %v1717_v33, %v1701_v20  ;;  %1957 = vmatprep.subr.bf16.mxu1 %v2832_v8  ;;  %v2838_v13 = vld [vmem:[#allocation7 + $0xc] ss:$44 sps:$4 sm:$0xff]   ;;  %v2836_v15 = vld [vmem:[#allocation7 + $0x8] ss:$44 sps:$4 sm:$0xff]  }
 0xc34   : > { %v1754_v28 = vsel %vm1751_vm11, %v1752_v37, %v1753_v23  ;;  %v1756_v32 = vsel %vm1751_vm11, %v1753_v23, %v1755_v21 }
 0xc35   : > { %v1739_v30 = vadd.f32 %v1734_v26, %v1720_v24  ;;  %v1740_v31 = vadd.f32 %v1736_v27, %v1721_v25  ;;  %v2839_v26 = vld [vmem:[#allocation9 + $0xf4] ss:$8 sps:$4 sm:$0xff]  }
 0xc36   : > { %1958 = vmatpush1.bf16.msra.mxu1 %v2830_v9  ;;  %v2840_v27 = vld [vmem:[#allocation9 + $0x74] ss:$8 sps:$4 sm:$0xff]   ;;  %2502 = vmatprep.subr.bf16.mxu0 %v2839_v26 }
 0xc37   : > { %v1759_v34 = vadd.f32 %v1754_v28, %v1739_v30  ;;  %v1760_v35 = vadd.f32 %v1756_v32, %v1740_v31  ;;  %1959 = vmatprep.subr.bf16.mxu1 %v2835_v11  ;;  %v2841_v30 = vld [vmem:[#allocation9 + $0xe4] ss:$8 sps:$4 sm:$0xff]   ;;  %v2843_v28 = vld [vmem:[#allocation9 + $0xd4] ss:$8 sps:$4 sm:$0xff]  }
 0xc38   : > { %v2842_v31 = vld [vmem:[#allocation9 + $0x64] ss:$8 sps:$4 sm:$0xff]   ;;  %v2844_v32 = vld [vmem:[#allocation9 + $0x54] ss:$8 sps:$4 sm:$0xff]  }
 0xc39   : > { %v1762_v29 = vadd.f32 %v1761_v51, %v1759_v34  ;;  %v1763_v36 = vadd.f32 %v1761_v51, %v1760_v35  ;;  %v2845_v51 = vld [vmem:[#allocation9 + $0xc4] ss:$8 sps:$4 sm:$0xff]   ;;  %v2847_v35 = vld [vmem:[#allocation9 + $0xb4] ss:$8 sps:$4 sm:$0xff]  }
 0xc3a   : > { %1960 = vmatpush1.bf16.msra.mxu1 %v2833_v12  ;;  %v2846_v34 = vld [vmem:[#allocation9 + $0x44] ss:$8 sps:$4 sm:$0xff]  }
 0xc3b   : > { %v1764_v38 = vmul.f32 0.5, %v1762_v29  ;;  %v1765_v40 = vmul.f32 0.5, %v1763_v36  ;;  %1961 = vmatprep.subr.bf16.mxu1 %v2838_v13 }
 0xc3d   : > { %2911 = vtanh.f32 %v1764_v38  ;;  %v2850_v38 = vld [vmem:[#allocation9 + $0x24] ss:$8 sps:$4 sm:$0xff]  }
 0xc3e   : > { %2913 = vtanh.f32 %v1765_v40  ;;  %1962 = vmatpush1.bf16.msra.mxu1 %v2836_v15  ;;  %v2851_v40 = vld [vmem:[#allocation9 + $0x94] ss:$8 sps:$4 sm:$0xff]  }
 0xc4a   : > { %v2912_v10 = vpop.eup %2911 }
 0xc4b   : > { %v2914_v0 = vpop.eup %2913  ;;  %v1768_v41 = vmul.f32 0.5, %v2912_v10  ;;  %v2852_v10 = vld [vmem:[#allocation9 + $0x14] ss:$8 sps:$4 sm:$0xff]  }
 0xc4c   : > { %v1769_v42 = vmul.f32 0.5, %v2914_v0  ;;  %v2853_v0 = vld [vmem:[#allocation9 + $0x84] ss:$8 sps:$4 sm:$0xff]  }
 0xc4d   : > { %v1770_v43 = vadd.f32 0.5, %v1768_v41  ;;  %v2854_v41 = vld [vmem:[#allocation9 + $0x4] ss:$8 sps:$4 sm:$0xff]  }
 0xc4e   : > { %v1771_v44 = vadd.f32 0.5, %v1769_v42  ;;  %v1892_v42 = vld [vmem:[#allocation10 + $0x1] ss:$8 sm:$0x3] }
 0xc4f   : > { %v1772_v1 = vmul.f32 %v1770_v43, %v1762_v29  ;;  %v2848_v29 = vld [vmem:[#allocation9 + $0x34] ss:$8 sps:$4 sm:$0xff]   ;;  %v1897_v43 = vrot.slane %v1892_v42, %v3355_v52 }
 0xc50   : > { %v1773_v45 = vmul.f32 %v1771_v44, %v1763_v36  ;;  %v2849_v36 = vld [vmem:[#allocation9 + $0xa4] ss:$8 sps:$4 sm:$0xff]   ;;  %v1901_v44 = vrot.slane %v1892_v42, %v3358_v54 }
 0xc52   : > { %v1774_v46 = vpack.c.bf16 %v1773_v45, %v1772_v1 }
 0xc54   : > { %2605 = vmatmul.mubr.msk.bf16.vlgmr.msra.gmra.mxu0 %vm271_vm0, %v1774_v46 }
 0xc55   : > { %2503 = vmatpush3.bf16.msra.mxu0 %v2840_v27 }
 0xc56   : > { %2504 = vmatprep.subr.bf16.mxu0 %v2841_v30 }
 0xc59   : > { %2505 = vmatpush3.bf16.msra.mxu0 %v2842_v31 }
 0xc5a   : > { %2506 = vmatprep.subr.bf16.mxu0 %v2843_v28 }
 0xc5d   : > { %2507 = vmatpush3.bf16.msra.mxu0 %v2844_v32 }
 0xc5e   : > { %2508 = vmatprep.subr.bf16.mxu0 %v2845_v51 }
 0xc61   : > { %2509 = vmatpush3.bf16.msra.mxu0 %v2846_v34 }
 0xc62   : > { %2510 = vmatprep.subr.bf16.mxu0 %v2847_v35 }
 0xc65   : > { %2511 = vmatpush3.bf16.msra.mxu0 %v2848_v29 }
 0xc66   : > { %2512 = vmatprep.subr.bf16.mxu0 %v2849_v36 }
 0xc69   : > { %2513 = vmatpush3.bf16.msra.mxu0 %v2850_v38 }
 0xc6a   : > { %2514 = vmatprep.subr.bf16.mxu0 %v2851_v40 }
 0xc6d   : > { %2515 = vmatpush3.bf16.msra.mxu0 %v2852_v10 }
 0xc6e   : > { %2516 = vmatprep.subr.bf16.mxu0 %v2853_v0 }
 0xc71   : > { %2517 = vmatpush3.bf16.msra.mxu0 %v2854_v41  ;;  %v2212_v41 = vld [vmem:[#allocation10 + $0x13] ss:$0 sm:$0xff] }
 0xd14   : > { %v1844_v47 = vpop.f32.mrf.mxu0 }
 0xd15   : > { %v1851_v49 = vadd.f32 %v1844_v47, %v3514_v14 }
 0xd16   : > { %v2606_v53 = vpop.f32.mrf.mxu0 }
 0xd17   : > { %v3556_v55 = vadd.f32 %v1853_v48, %v1851_v49 }
 0xd18   : > { %v1847_v57 = vpop.f32.mrf.mxu0 }
 0xd19   : > { %v1852_v58 = vadd.f32 %v1847_v57, %v3519_v50  ;;  %v1856_v59 = vsel %vm271_vm0, %v3556_v55, 0.0 }
 0xd1a   : > { %1857 = vadd.xlane.f32.xlu0 %v1856_v59  ;;  %v2607_v60 = vpop.f32.mrf.mxu0 }
 0xd1b   : > { %v3561_v18 = vadd.f32 %v1853_v48, %v1852_v58 }
 0xd1d   : > { %v1859_v61 = vsel %vm271_vm0, %v3561_v18, 0.0 }
 0xd1e   : > { %1860 = vadd.xlane.f32.xlu1 %v1859_v61 }
 0xda3   : > { %v1858_v62 = vpop.xlane.xlu0 %1857 }
 0xda4   : > { %v1862_v63 = vmul.f32 0.015625, %v1858_v62 }
 0xda6   : > { %v1864_v14 = vsub.f32 %v3556_v55, %v1862_v63 }
 0xda7   : > { %v1861_v2 = vpop.xlane.xlu1 %1860 }
 0xda8   : > { %v1863_v39 = vmul.f32 0.015625, %v1861_v2  ;;  %v1866_v3 = vmul.f32 %v1864_v14, %v1864_v14 }
 0xdaa   : > { %v1865_v50 = vsub.f32 %v3561_v18, %v1863_v39  ;;  %v1868_v4 = vsel %vm271_vm0, %v1866_v3, 0.0 }
 0xdab   : > { %1869 = vadd.xlane.f32.xlu0 %v1868_v4 }
 0xdac   : > { %v1867_v5 = vmul.f32 %v1865_v50, %v1865_v50 }
 0xdae   : > { %v1871_v6 = vsel %vm271_vm0, %v1867_v5, 0.0 }
 0xdaf   : > { %1872 = vadd.xlane.f32.xlu1 %v1871_v6 }
 0xe34   : > { %v1870_v16 = vpop.xlane.xlu0 %1869 }
 0xe35   : > { %v1874_v17 = vmul.f32 0.015625, %v1870_v16 }
 0xe37   : > { %v1876_v19 = vadd.f32 1e-12, %v1874_v17 }
 0xe38   : > { %v1873_v20 = vpop.xlane.xlu1 %1872 }
 0xe39   : > { %v1875_v21 = vmul.f32 0.015625, %v1873_v20  ;;  %2915 = vrsqrt.f32 %v1876_v19  ;;  %v2183_v19 = vld [vmem:[#allocation10 + $0x10] ss:$0 sm:$0xff] }
 0xe3b   : > { %v1877_v22 = vadd.f32 1e-12, %v1875_v21 }
 0xe3d   : > { %2917 = vrsqrt.f32 %v1877_v22 }
 0xe46   : > { %v2916_v33 = vpop.eup %2915 }
 0xe47   : > { %v1880_v24 = vmul.f32 %v2916_v33, %v1864_v14 }
 0xe4a   : > { %v2918_v23 = vpop.eup %2917 }
 0xe4b   : > { %v1881_v25 = vmul.f32 %v2918_v23, %v1865_v50 }
 0xe4d   : > { %v1882_v37 = vpack.c.bf16 %v1881_v25, %v1880_v24 }
 0xe4f   : > { %2425 = vmatmul.mubr.msk.bf16.vlgmr.msra.gmra.mxu1 %vm271_vm0, %v1882_v37 }
 0xf0f   : > { %v1981_v1 = vpop.f32.mrf.mxu1 }
 0xf10   : > { %v1982_v45 = vadd.f32 %v1981_v1, %v1897_v43 }
 0xf11   : > { %v1983_v46 = vpop.f32.mrf.mxu1 }
 0xf12   : > { %v1990_v47 = vmul.f32 0.5, %v1982_v45  ;;  %v1984_v48 = vadd.f32 %v1983_v46, %v1901_v44 }
 0xf13   : > { %v1985_v49 = vpop.f32.mrf.mxu1 }
 0xf14   : > { %v1991_v53 = vmul.f32 0.5, %v1984_v48  ;;  %v1986_v57 = vadd.f32 %v1985_v49, %v1897_v43  ;;  %2919 = vtanh.f32 %v1990_v47  ;;  %v2215_v43 = vld [vmem:[#allocation10 + $0x14] ss:$0 sm:$0xff] }
 0xf15   : > { %v1987_v58 = vpop.f32.mrf.mxu1 }
 0xf16   : > { %2921 = vtanh.f32 %v1991_v53  ;;  %v1992_v59 = vmul.f32 0.5, %v1986_v57  ;;  %v1988_v60 = vadd.f32 %v1987_v58, %v1901_v44 }
 0xf18   : > { %2923 = vtanh.f32 %v1992_v59  ;;  %v1993_v61 = vmul.f32 0.5, %v1988_v60 }
 0xf1a   : > { %2925 = vtanh.f32 %v1993_v61 }
 0xf21   : > { %v2920_v62 = vpop.eup %2919 }
 0xf22   : > { %v1998_v14 = vmul.f32 0.5, %v2920_v62 }
 0xf23   : > { %v2922_v52 = vpop.eup %2921 }
 0xf24   : > { %v1999_v63 = vmul.f32 0.5, %v2922_v52  ;;  %v2002_v5 = vadd.f32 0.5, %v1998_v14 }
 0xf25   : > { %v2924_v54 = vpop.eup %2923 }
 0xf26   : > { %v2000_v2 = vmul.f32 0.5, %v2924_v54  ;;  %v2003_v3 = vadd.f32 0.5, %v1999_v63  ;;  %v2006_v9 = vmul.f32 %v2002_v5, %v1982_v45 }
 0xf27   : > { %v2926_v39 = vpop.eup %2925 }
 0xf28   : > { %v2004_v50 = vadd.f32 0.5, %v2000_v2  ;;  %v2001_v4 = vmul.f32 0.5, %v2926_v39  ;;  %v2007_v7 = vmul.f32 %v2003_v3, %v1984_v48 }
 0xf2a   : > { %v2005_v6 = vadd.f32 0.5, %v2001_v4  ;;  %v2008_v56 = vmul.f32 %v2004_v50, %v1986_v57 }
 0xf2c   : > { %v2009_v8 = vmul.f32 %v2005_v6, %v1988_v60  ;;  %v2010_v12 = vpack.c.bf16 %v2008_v56, %v2006_v9 }
 0xf2e   : > { %v2011_v11 = vpack.c.bf16 %v2009_v8, %v2007_v7 }
 0xf30   : > { %2172 = vmatprep.mubr.bf16.mxu0 %v2011_v11 }
 0xf31   : > { %2173 = vmatmul.mubr.bf16.vlgmr.msra.gmra.mxu0 %v2010_v12 }
 0xff1   : > { %v2518_v13 = vpop.f32.mrf.mxu0 }
 0xff3   : > { %v2519_v15 = vpop.f32.mrf.mxu0 }
 0xff4   : > { %v2520_v16 = vadd.f32 %v2519_v15, %v2518_v13 }
 0xff5   : > { %v2521_v17 = vpop.f32.mrf.mxu0 }
 0xff6   : > { %v2181_v20 = vadd.f32 %v2520_v16, %v3556_v55 }
 0xff7   : > { %v2522_v21 = vpop.f32.mrf.mxu0 }
 0xff8   : > { %v2523_v22 = vadd.f32 %v2522_v21, %v2521_v17  ;;  %v2184_v33 = vadd.f32 %v2183_v19, %v2181_v20 }
 0xffa   : > { %v2182_v23 = vadd.f32 %v2523_v22, %v3561_v18  ;;  %v2186_v24 = vsel %vm271_vm0, %v2184_v33, 0.0 }
 0xffb   : > { %2187 = vadd.xlane.f32.xlu0 %v2186_v24 }
 0xffc   : > { %v2185_v25 = vadd.f32 %v2183_v19, %v2182_v23 }
 0xffe   : > { %v2189_v37 = vsel %vm271_vm0, %v2185_v25, 0.0 }
 0xfff   : > { %2190 = vadd.xlane.f32.xlu1 %v2189_v37 }
0x1084   : > { %v2188_v26 = vpop.xlane.xlu0 %2187 }
0x1085   : > { %v2192_v27 = vmul.f32 0.015625, %v2188_v26 }
0x1087   : > { %v2194_v30 = vsub.f32 %v2184_v33, %v2192_v27 }
0x1088   : > { %v2191_v31 = vpop.xlane.xlu1 %2190 }
0x1089   : > { %v2193_v28 = vmul.f32 0.015625, %v2191_v31  ;;  %v2196_v32 = vmul.f32 %v2194_v30, %v2194_v30 }
0x108b   : > { %v2195_v51 = vsub.f32 %v2185_v25, %v2193_v28  ;;  %v2198_v55 = vsel %vm271_vm0, %v2196_v32, 0.0 }
0x108c   : > { %2199 = vadd.xlane.f32.xlu0 %v2198_v55 }
0x108d   : > { %v2197_v34 = vmul.f32 %v2195_v51, %v2195_v51 }
0x108f   : > { %v2201_v18 = vsel %vm271_vm0, %v2197_v34, 0.0 }
0x1090   : > { %2202 = vadd.xlane.f32.xlu1 %v2201_v18 }
0x1115   : > { %v2200_v35 = vpop.xlane.xlu0 %2199 }
0x1116   : > { %v2204_v29 = vmul.f32 0.015625, %v2200_v35 }
0x1118   : > { %v2206_v36 = vadd.f32 1e-12, %v2204_v29 }
0x1119   : > { %v2203_v38 = vpop.xlane.xlu1 %2202 }
0x111a   : > { %2927 = vrsqrt.f32 %v2206_v36  ;;  %v2205_v40 = vmul.f32 0.015625, %v2203_v38 }
0x111c   : > { %v2207_v10 = vadd.f32 1e-12, %v2205_v40 }
0x111e   : > { %2929 = vrsqrt.f32 %v2207_v10 }
0x1127   : > { %v2928_v0 = vpop.eup %2927 }
0x1128   : > { %v2210_v42 = vmul.f32 %v2928_v0, %v2194_v30 }
0x112a   : > { %v2213_v44 = vmul.f32 %v2212_v41, %v2210_v42 }
0x112b   : > { %v2930_v1 = vpop.eup %2929 }
0x112c   : > { %v2216_v45 = vadd.f32 %v2215_v43, %v2213_v44  ;;  %v2211_v46 = vmul.f32 %v2930_v1, %v2195_v51 }
0x112e   : > { %v2214_v47 = vmul.f32 %v2212_v41, %v2211_v46  ;;  %2218 = vst.msk [vmem:[%s264_s18] sm:$0xff] %vm271_vm0, %v2216_v45 }
0x1130   : > { %v2217_v48 = vadd.f32 %v2215_v43, %v2214_v47 }
0x1132   : > { %2219 = vst.msk [vmem:[%s264_s18 + $0x8] sm:$0xff] %vm271_vm0, %v2217_v48 }
0x1133   : > { %3058 = shalt.err (!%p3055_p9)
}
0x1134   : > { %s3059_s28 = scalar_lea.hbm %s3585_s10, 256  ;;  %s3063_s20 = scalar_lea.hbm %s3636_s5, 512 }
0x1135   : > { %p3060_p7 = scmp.ne.s32.totalorder %s3585_s10, %s3059_s28  ;;  %p3064_p6 = scmp.lt.s32.totalorder %s3585_s10, %s3636_s5 }
0x1136   : > { %p3065_p11 = scmp.lt.s32.totalorder %s3063_s20, %s3059_s28 }
0x1137   : > { %p3061_p4 = pnand %p3060_p7, %p3656_p0 }
0x1138   : > { %p3066_p13 = por %p3065_p11, %p3064_p6 }
0x1139   : > { %p3062_p8 = pneg %p3061_p4 }
0x113b   : > { %p3067_p12 = pnand %p3066_p13, %p3062_p8 }
0x113d   : > { %3070 = shalt.err (!%p3067_p12)
}
0x113e   : > { %s3142_s17 = smov 128   ;;  %s3143_s18 = smov 8  }
0x113f   : > { %2622 = dma.vmem_to_hbm [thread:$0]  (%p3656_p0), %s3587_s6, 256, %s3585_s10, %s2221_s0, %s3142_s17, %s3142_s17, %s3143_s18  }
0x1140 PF: > { %s2249_s19 = sand.u32 1, %s3107_s21   ;;  %p3657_p5 = scmp.ne.s32.totalorder %s3642_s27, 0 }
0x1141   : > { %p3658_p10 = scmp.ge.s32.totalorder %s3119_s24, 2  ;;  %s2250_s25 = scalar_lea.sflag [#allocation6], %s2249_s19 }
0x1143   : > { %p2639_p1 = pnand %p3658_p10, %p3657_p5 }
0x1145   : > { %p2640_p2 = pneg %p2639_p1 }
0x1147   : > { %3102 = dma.done.wait (%p2640_p2), %s2250_s25, 256  }
0x1148   : > { %3104 = vsyncadd (%p2640_p2), %s2250_s25, 4294967040  ;;  %p24_p3 = scmp.ge.s32.totalorder %s3260_s9, 4   ;;  %s3659_s21 = smov %s3111_s22 }
0x1149   : > { %s3660_s22 = smov %s3115_s23  ;;  %s3661_s23 = smov %s3270_s12 }
0x114a   : > { %s3662_s24 = smov %s3260_s9  ;;  %26 = sbr.rel (!%p24_p3) target bundleno = 12 (0xc), region = 95 }
0x114f   :  { %2255 = vsyncpa [#allocation5], 1 }
0x1150   :  { %2257 = vsyncpa [#allocation5 + $0x1], 1 }
0x1151   :  { %2258 = vsyncpa [#allocation8], 1 }
0x1152   :  { %2259 = vsyncpa [#allocation11], 1 }
0x1153   :  { %2260 = vsyncpa [#allocation6], 1 }
0x1154   :  { %2262 = vsyncpa [#allocation6 + $0x1], 1 }

</bundles_post_ra>
